<compile_context>
chip_gen: v7x
topology: tpu7x:2x2x1
jax: 0.10.0
libtpu: 0.0.40
codegen_flags: <defaults>
</compile_context>

<pallas_src>
import functools

import jax
import jax.numpy as jnp
from jax.experimental import pallas as pl
from jax.experimental.pallas import tpu as pltpu

# ---------------- small BERT-like config ----------------
VOCAB = 64
HIDDEN = 32
NUM_LAYERS = 2
NUM_HEADS = 2
HEAD_DIM = HIDDEN // NUM_HEADS
INTERMEDIATE = 64
MAX_POS = 16
TYPE_VOCAB = 2
NUM_LABELS = 2
PAD_ID = 0
LN_EPS = 1e-12
BATCH = 2
SEQ = 8


# ---------------- in-kernel helpers (traced into the fused kernel) ----------------
def _layernorm(x, gamma, beta, eps):
    mean = jnp.mean(x, axis=-1, keepdims=True)
    xc = x - mean
    var = jnp.mean(xc * xc, axis=-1, keepdims=True)
    return xc * jax.lax.rsqrt(var + eps) * gamma + beta


def _gelu_tanh(x):
    # TODO(synk): HF BERT default is exact erf-GELU; tanh approximation used here.
    return 0.5 * x * (1.0 + jnp.tanh(0.7978845608028654 * (x + 0.044715 * x * x * x)))


# ---------------- the fused whole-model kernel ----------------
def _bert_fused_kernel(we_ref, te_ref, pe_ref, emb_g_ref, emb_b_ref,
                       wqkv_ref, bqkv_ref, wo_ref, bo_ref, ln1g_ref, ln1b_ref,
                       wi_ref, bi_ref, wo2_ref, bo2_ref, ln2g_ref, ln2b_ref,
                       pool_w_ref, pool_b_ref, cls_w_ref, cls_b_ref, onehot_ref,
                       *rest,
                       has_summary, batch, seq, num_heads, head_dim, num_layers, eps):
    if has_summary:
        se_ref, logits_ref, loss_ref = rest
    else:
        logits_ref, loss_ref = rest

    hidden = num_heads * head_dim
    bf16 = jnp.bfloat16
    f32 = jnp.float32

    # ---- embeddings: sum + LayerNorm (f32) ----
    x = we_ref[...] + te_ref[...] + pe_ref[...]
    if has_summary:
        x = x + se_ref[...]
    x = _layernorm(x, emb_g_ref[...], emb_b_ref[...], eps)

    # ---- encoder layers (statically unrolled; weights stay in VMEM) ----
    for l in range(num_layers):
        # fused Q/K/V projection: one MXU pass with N = 3*H
        # (1/sqrt(head_dim) already folded into the Q weight/bias columns on the host)
        qkv = jnp.dot(x.astype(bf16), wqkv_ref[l],
                      preferred_element_type=f32) + bqkv_ref[l]
        qkv_bf = qkv.astype(bf16)                       # single per-layer cast
        q = qkv_bf[:, 0:hidden]
        k = qkv_bf[:, hidden:2 * hidden]
        v = qkv_bf[:, 2 * hidden:3 * hidden]

        # stage (B*NH, S, D) via static slices + stack (no transposes needed)
        def per_head(t):
            return jnp.stack(
                [t[b * seq:(b + 1) * seq, h * head_dim:(h + 1) * head_dim]
                 for b in range(batch) for h in range(num_heads)], axis=0)

        q3, k3, v3 = per_head(q), per_head(k), per_head(v)

        # one batched contraction for all (batch, head) pairs
        s = jnp.einsum('bqd,bkd->bqk', q3, k3, preferred_element_type=f32)
        m = jnp.max(s, axis=-1, keepdims=True)
        p = jnp.exp(s - m)
        p = p * pl.reciprocal(jnp.sum(p, axis=-1, keepdims=True), approx=True)
        ctx3 = jnp.einsum('bqk,bkd->bqd', p.astype(bf16), v3,
                          preferred_element_type=f32)

        # in-register context assembly (no VMEM scratch, no masked partial stores)
        ctx = jnp.concatenate(
            [jnp.concatenate([ctx3[b * num_heads + h] for h in range(num_heads)],
                             axis=-1)
             for b in range(batch)], axis=0)

        attn_out = jnp.dot(ctx.astype(bf16), wo_ref[l],
                           preferred_element_type=f32) + bo_ref[l]
        x = _layernorm(attn_out + x, ln1g_ref[l], ln1b_ref[l], eps)

        inter = jnp.dot(x.astype(bf16), wi_ref[l],
                        preferred_element_type=f32) + bi_ref[l]
        inter = _gelu_tanh(inter)
        ffn = jnp.dot(inter.astype(bf16), wo2_ref[l],
                      preferred_element_type=f32) + bo2_ref[l]
        x = _layernorm(ffn + x, ln2g_ref[l], ln2b_ref[l], eps)

    # ---- pooler on [CLS] tokens: static f32 row slices (rows b*seq) ----
    cls_tok = jnp.concatenate([x[b * seq:b * seq + 1, :] for b in range(batch)],
                              axis=0)                                        # (B, H) f32

    pooled = jnp.tanh(jnp.dot(cls_tok.astype(bf16), pool_w_ref[...],
                              preferred_element_type=f32) + pool_b_ref[...])
    logits = jnp.dot(pooled.astype(bf16), cls_w_ref[...],
                     preferred_element_type=f32) + cls_b_ref[...]            # (B, NL)
    logits_ref[...] = logits

    # ---- cross-entropy loss ----
    m = jnp.max(logits, axis=-1, keepdims=True)
    lse = m + jnp.log(jnp.sum(jnp.exp(logits - m), axis=-1, keepdims=True))
    nll = jnp.sum(onehot_ref[...] * (lse - logits), axis=-1, keepdims=True)  # (B, 1)
    loss_ref[...] = jnp.sum(nll, axis=0, keepdims=True) * (1.0 / batch)      # (1, 1)


# ---------------- wrapper: one pallas_call for the whole model ----------------
def _full_spec(shape):
    nd = len(shape)

    def idx_map(i):
        return (0,) * nd

    return pl.BlockSpec(tuple(shape), idx_map)


def _stack_layer_params(layers):
    bf16, f32 = jnp.bfloat16, jnp.float32
    scale = 1.0 / (HEAD_DIM ** 0.5)     # folded into Q columns (weights + bias)
    wqkv = jnp.stack([jnp.concatenate([l["wq"] * scale, l["wk"], l["wv"]], axis=1)
                      for l in layers]).astype(bf16)
    bqkv = jnp.stack([jnp.concatenate([l["bq"] * scale, l["bk"], l["bv"]])[None, :]
                      for l in layers]).astype(f32)
    wo = jnp.stack([l["wo"] for l in layers]).astype(bf16)
    bo = jnp.stack([l["bo"][None, :] for l in layers]).astype(f32)
    ln1g = jnp.stack([l["ln1_g"][None, :] for l in layers]).astype(f32)
    ln1b = jnp.stack([l["ln1_b"][None, :] for l in layers]).astype(f32)
    wi = jnp.stack([l["wi"] for l in layers]).astype(bf16)
    bi = jnp.stack([l["bi"][None, :] for l in layers]).astype(f32)
    wo2 = jnp.stack([l["wo2"] for l in layers]).astype(bf16)
    bo2 = jnp.stack([l["bo2"][None, :] for l in layers]).astype(f32)
    ln2g = jnp.stack([l["ln2_g"][None, :] for l in layers]).astype(f32)
    ln2b = jnp.stack([l["ln2_b"][None, :] for l in layers]).astype(f32)
    return [wqkv, bqkv, wo, bo, ln1g, ln1b, wi, bi, wo2, bo2, ln2g, ln2b]


def _bert_fused_call(params, we, te, pe, se, onehot):
    tokens, H = we.shape
    B = onehot.shape[0]
    has_summary = se is not None

    inputs = [we, te, pe,
              params["emb_ln_g"].reshape(1, H), params["emb_ln_b"].reshape(1, H)]
    inputs += _stack_layer_params(params["layers"])
    inputs += [params["pooler_w"].astype(jnp.bfloat16),
               params["pooler_b"].reshape(1, H),
               params["cls_w"].astype(jnp.bfloat16),
               params["cls_b"].reshape(1, NUM_LABELS),
               onehot]
    if has_summary:
        inputs.append(se)

    kernel = functools.partial(
        _bert_fused_kernel,
        has_summary=has_summary, batch=B, seq=tokens // B,
        num_heads=NUM_HEADS, head_dim=HEAD_DIM, num_layers=NUM_LAYERS, eps=LN_EPS)

    logits, loss = pl.pallas_call(
        kernel,
        out_shape=(jax.ShapeDtypeStruct((B, NUM_LABELS), jnp.float32),
                   jax.ShapeDtypeStruct((1, 1), jnp.float32)),
        grid=(1,),
        in_specs=[_full_spec(a.shape) for a in inputs],
        out_specs=(_full_spec((B, NUM_LABELS)), _full_spec((1, 1))),
        compiler_params=pltpu.CompilerParams(dimension_semantics=("arbitrary",)),
    )(*inputs)
    return logits, loss[0, 0]


# ---------------- deterministic synthetic parameters ----------------
def init_params(key):
    keys = iter(jax.random.split(key, 64))

    def nrm(shape):
        return 0.02 * jax.random.normal(next(keys), shape, dtype=jnp.float32)

    params = {
        "word_emb": nrm((VOCAB, HIDDEN)).at[PAD_ID].set(0.0),      # padding_idx row = 0
        "pos_emb": nrm((MAX_POS, HIDDEN)),
        "type_emb": nrm((TYPE_VOCAB, HIDDEN)),
        "summ_emb": nrm((TYPE_VOCAB, HIDDEN)).at[PAD_ID].set(0.0),  # padding_idx row = 0
        "emb_ln_g": jnp.ones((HIDDEN,), jnp.float32),
        "emb_ln_b": jnp.zeros((HIDDEN,), jnp.float32),
        "layers": [],
    }
    for _ in range(NUM_LAYERS):
        params["layers"].append(dict(
            wq=nrm((HIDDEN, HIDDEN)), bq=jnp.zeros((HIDDEN,), jnp.float32),
            wk=nrm((HIDDEN, HIDDEN)), bk=jnp.zeros((HIDDEN,), jnp.float32),
            wv=nrm((HIDDEN, HIDDEN)), bv=jnp.zeros((HIDDEN,), jnp.float32),
            wo=nrm((HIDDEN, HIDDEN)), bo=jnp.zeros((HIDDEN,), jnp.float32),
            ln1_g=jnp.ones((HIDDEN,), jnp.float32), ln1_b=jnp.zeros((HIDDEN,), jnp.float32),
            wi=nrm((HIDDEN, INTERMEDIATE)), bi=jnp.zeros((INTERMEDIATE,), jnp.float32),
            wo2=nrm((INTERMEDIATE, HIDDEN)), bo2=jnp.zeros((HIDDEN,), jnp.float32),
            ln2_g=jnp.ones((HIDDEN,), jnp.float32), ln2_b=jnp.zeros((HIDDEN,), jnp.float32),
        ))
    params["pooler_w"] = nrm((HIDDEN, HIDDEN))
    params["pooler_b"] = jnp.zeros((HIDDEN,), jnp.float32)
    params["cls_w"] = nrm((HIDDEN, NUM_LABELS))
    params["cls_b"] = jnp.zeros((NUM_LABELS,), jnp.float32)
    return params


# ---------------- forward pass (mirrors BertClassifier.forward) ----------------
@functools.partial(jax.jit, static_argnames=("summ",))
def bert_classifier_forward(params, input_ids, token_type_ids, attention_mask, labels,
                            summary_ids=None, summ=False):
    B, S = input_ids.shape
    H = HIDDEN

    if summ:
        pos_ids = jnp.arange(S, dtype=jnp.int32)[None, :]   # buffered position_ids[:, :S]
        tok_ids = token_type_ids
    else:
        # Reference code passes attention_mask as position_ids and uses buffered zero
        # token_type_ids in this branch; semantics preserved.
        pos_ids = attention_mask
        tok_ids = jnp.zeros((B, S), dtype=jnp.int32)

    # Embedding gathers (data-dependent) kept as XLA glue; everything else is one kernel.
    we = jnp.take(params["word_emb"], input_ids, axis=0).reshape(B * S, H)
    te = jnp.take(params["type_emb"], tok_ids, axis=0).reshape(B * S, H)
    pe = jnp.broadcast_to(jnp.take(params["pos_emb"], pos_ids, axis=0),
                          (B, S, H)).reshape(B * S, H)
    if summ and summary_ids is not None:
        se = jnp.take(params["summ_emb"], summary_ids, axis=0).reshape(B * S, H)
    else:
        se = None   # summary-embedding input dropped entirely (no dead zeros tensor)

    onehot = jax.nn.one_hot(labels, NUM_LABELS, dtype=jnp.float32)
    logits, loss = _bert_fused_call(params, we, te, pe, se, onehot)
    return logits, loss


# ---------------- pure-JAX f32 reference (correctness check only) ----------------
def _reference_forward(params, input_ids, token_type_ids, attention_mask, labels,
                       summary_ids=None, summ=False):
    B, S = input_ids.shape
    H = HIDDEN
    if summ:
        pos_ids = jnp.arange(S, dtype=jnp.int32)[None, :]
        tok_ids = token_type_ids
    else:
        pos_ids = attention_mask
        tok_ids = jnp.zeros((B, S), dtype=jnp.int32)
    x = (jnp.take(params["word_emb"], input_ids, axis=0)
         + jnp.take(params["type_emb"], tok_ids, axis=0)
         + jnp.broadcast_to(jnp.take(params["pos_emb"], pos_ids, axis=0), (B, S, H)))
    if summ and summary_ids is not None:
        x = x + jnp.take(params["summ_emb"], summary_ids, axis=0)

    def ln(v, g, b):
        mu = v.mean(-1, keepdims=True)
        d = v - mu
        return d * jax.lax.rsqrt((d * d).mean(-1, keepdims=True) + LN_EPS) * g + b

    x = ln(x.reshape(B * S, H), params["emb_ln_g"], params["emb_ln_b"])
    for lyr in params["layers"]:
        q = x @ lyr["wq"] + lyr["bq"]
        k = x @ lyr["wk"] + lyr["bk"]
        v = x @ lyr["wv"] + lyr["bv"]

        def heads(t):
            return t.reshape(B, S, NUM_HEADS, HEAD_DIM).transpose(0, 2, 1, 3)

        s = jnp.einsum("bhqd,bhkd->bhqk", heads(q), heads(k)) / (HEAD_DIM ** 0.5)
        p = jax.nn.softmax(s, axis=-1)
        ctx = jnp.einsum("bhqk,bhkd->bhqd", p, heads(v)).transpose(0, 2, 1, 3).reshape(B * S, H)
        x = ln(ctx @ lyr["wo"] + lyr["bo"] + x, lyr["ln1_g"], lyr["ln1_b"])
        inter = x @ lyr["wi"] + lyr["bi"]
        inter = 0.5 * inter * (1.0 + jnp.tanh(0.7978845608028654 * (inter + 0.044715 * inter ** 3)))
        x = ln(inter @ lyr["wo2"] + lyr["bo2"] + x, lyr["ln2_g"], lyr["ln2_b"])
    cls = x.reshape(B, S, H)[:, 0, :]
    pooled = jnp.tanh(cls @ params["pooler_w"] + params["pooler_b"])
    logits = pooled @ params["cls_w"] + params["cls_b"]
    onehot = jax.nn.one_hot(labels, NUM_LABELS, dtype=jnp.float32)
    lse = jax.scipy.special.logsumexp(logits, axis=-1, keepdims=True)
    loss = jnp.mean(jnp.sum(onehot * (lse - logits), axis=-1))
    return logits, loss


if __name__ == "__main__":
    key = jax.random.PRNGKey(0)
    pkey, dkey = jax.random.split(key)
    params = init_params(pkey)

    k1, k2, k3 = jax.random.split(dkey, 3)
    input_ids = jax.random.randint(k1, (BATCH, SEQ), 0, VOCAB, dtype=jnp.int32)
    token_type_ids = jnp.zeros((BATCH, SEQ), dtype=jnp.int32)
    attention_mask = jnp.ones((BATCH, SEQ), dtype=jnp.int32)
    summary_ids = jax.random.randint(k2, (BATCH, SEQ), 0, TYPE_VOCAB, dtype=jnp.int32)
    labels = jax.random.randint(k3, (BATCH,), 0, NUM_LABELS, dtype=jnp.int32)

    # summ=True path (uses summary embeddings, default position ids)
    logits_s, loss_s = bert_classifier_forward(
        params, input_ids, token_type_ids, attention_mask, labels,
        summary_ids=summary_ids, summ=True)
    # summ=False path (attention_mask used as position_ids, as in the reference code)
    logits_d, loss_d = bert_classifier_forward(
        params, input_ids, token_type_ids, attention_mask, labels, summ=False)
    jax.block_until_ready((logits_s, loss_s, logits_d, loss_d))

    # correctness vs pure-JAX f32 reference (tolerance covers bf16 matmul inputs)
    ref_ls, ref_loss_s = _reference_forward(
        params, input_ids, token_type_ids, attention_mask, labels,
        summary_ids=summary_ids, summ=True)
    ref_ld, ref_loss_d = _reference_forward(
        params, input_ids, token_type_ids, attention_mask, labels, summ=False)
    assert jnp.allclose(logits_s, ref_ls, atol=1e-2), "summ=True logits mismatch"
    assert jnp.allclose(loss_s, ref_loss_s, atol=1e-2), "summ=True loss mismatch"
    assert jnp.allclose(logits_d, ref_ld, atol=1e-2), "summ=False logits mismatch"
    assert jnp.allclose(loss_d, ref_loss_d, atol=1e-2), "summ=False loss mismatch"

    print("KERNEL_OK")
</pallas_src>

<mosaic_0001>
module attributes {stable_mosaic.version = 11 : i64} {
  func.func @_bert_fused_kernel(%arg0: i32, %arg1: memref<16x32xf32, #tpu.memory_space<vmem>>, %arg2: memref<16x32xf32, #tpu.memory_space<vmem>>, %arg3: memref<16x32xf32, #tpu.memory_space<vmem>>, %arg4: memref<1x32xf32, #tpu.memory_space<vmem>>, %arg5: memref<1x32xf32, #tpu.memory_space<vmem>>, %arg6: memref<2x32x96xbf16, #tpu.memory_space<vmem>>, %arg7: memref<2x1x96xf32, #tpu.memory_space<vmem>>, %arg8: memref<2x32x32xbf16, #tpu.memory_space<vmem>>, %arg9: memref<2x1x32xf32, #tpu.memory_space<vmem>>, %arg10: memref<2x1x32xf32, #tpu.memory_space<vmem>>, %arg11: memref<2x1x32xf32, #tpu.memory_space<vmem>>, %arg12: memref<2x32x64xbf16, #tpu.memory_space<vmem>>, %arg13: memref<2x1x64xf32, #tpu.memory_space<vmem>>, %arg14: memref<2x64x32xbf16, #tpu.memory_space<vmem>>, %arg15: memref<2x1x32xf32, #tpu.memory_space<vmem>>, %arg16: memref<2x1x32xf32, #tpu.memory_space<vmem>>, %arg17: memref<2x1x32xf32, #tpu.memory_space<vmem>>, %arg18: memref<32x32xbf16, #tpu.memory_space<vmem>>, %arg19: memref<1x32xf32, #tpu.memory_space<vmem>>, %arg20: memref<32x2xbf16, #tpu.memory_space<vmem>>, %arg21: memref<1x2xf32, #tpu.memory_space<vmem>>, %arg22: memref<2x2xf32, #tpu.memory_space<vmem>>, %arg23: memref<16x32xf32, #tpu.memory_space<vmem>>, %arg24: memref<2x2xf32, #tpu.memory_space<vmem>>, %arg25: memref<1x1xf32, #tpu.memory_space<vmem>>) attributes {dimension_semantics = [#tpu.dimension_semantics<arbitrary>], iteration_bounds = array<i64: 1>, scalar_prefetch = 0 : i64, scratch_operands = 0 : i64, tpu.core_type = #tpu.core_type<tc>, window_params = [{pipeline_mode = #tpu.pipeline_mode<synchronous>, transform_indices = @transform_0, window_bounds = array<i64: 16, 32>}, {pipeline_mode = #tpu.pipeline_mode<synchronous>, transform_indices = @transform_1, window_bounds = array<i64: 16, 32>}, {pipeline_mode = #tpu.pipeline_mode<synchronous>, transform_indices = @transform_2, window_bounds = array<i64: 16, 32>}, {pipeline_mode = #tpu.pipeline_mode<synchronous>, transform_indices = @transform_3, window_bounds = array<i64: 1, 32>}, {pipeline_mode = #tpu.pipeline_mode<synchronous>, transform_indices = @transform_4, window_bounds = array<i64: 1, 32>}, {pipeline_mode = #tpu.pipeline_mode<synchronous>, transform_indices = @transform_5, window_bounds = array<i64: 2, 32, 96>}, {pipeline_mode = #tpu.pipeline_mode<synchronous>, transform_indices = @transform_6, window_bounds = array<i64: 2, 1, 96>}, {pipeline_mode = #tpu.pipeline_mode<synchronous>, transform_indices = @transform_7, window_bounds = array<i64: 2, 32, 32>}, {pipeline_mode = #tpu.pipeline_mode<synchronous>, transform_indices = @transform_8, window_bounds = array<i64: 2, 1, 32>}, {pipeline_mode = #tpu.pipeline_mode<synchronous>, transform_indices = @transform_9, window_bounds = array<i64: 2, 1, 32>}, {pipeline_mode = #tpu.pipeline_mode<synchronous>, transform_indices = @transform_10, window_bounds = array<i64: 2, 1, 32>}, {pipeline_mode = #tpu.pipeline_mode<synchronous>, transform_indices = @transform_11, window_bounds = array<i64: 2, 32, 64>}, {pipeline_mode = #tpu.pipeline_mode<synchronous>, transform_indices = @transform_12, window_bounds = array<i64: 2, 1, 64>}, {pipeline_mode = #tpu.pipeline_mode<synchronous>, transform_indices = @transform_13, window_bounds = array<i64: 2, 64, 32>}, {pipeline_mode = #tpu.pipeline_mode<synchronous>, transform_indices = @transform_14, window_bounds = array<i64: 2, 1, 32>}, {pipeline_mode = #tpu.pipeline_mode<synchronous>, transform_indices = @transform_15, window_bounds = array<i64: 2, 1, 32>}, {pipeline_mode = #tpu.pipeline_mode<synchronous>, transform_indices = @transform_16, window_bounds = array<i64: 2, 1, 32>}, {pipeline_mode = #tpu.pipeline_mode<synchronous>, transform_indices = @transform_17, window_bounds = array<i64: 32, 32>}, {pipeline_mode = #tpu.pipeline_mode<synchronous>, transform_indices = @transform_18, window_bounds = array<i64: 1, 32>}, {pipeline_mode = #tpu.pipeline_mode<synchronous>, transform_indices = @transform_19, window_bounds = array<i64: 32, 2>}, {pipeline_mode = #tpu.pipeline_mode<synchronous>, transform_indices = @transform_20, window_bounds = array<i64: 1, 2>}, {pipeline_mode = #tpu.pipeline_mode<synchronous>, transform_indices = @transform_21, window_bounds = array<i64: 2, 2>}, {pipeline_mode = #tpu.pipeline_mode<synchronous>, transform_indices = @transform_22, window_bounds = array<i64: 16, 32>}, {pipeline_mode = #tpu.pipeline_mode<synchronous>, transform_indices = @transform_23, window_bounds = array<i64: 2, 2>}, {pipeline_mode = #tpu.pipeline_mode<synchronous>, transform_indices = @transform_24, window_bounds = array<i64: 1, 1>}]} {
    %c0 = arith.constant 0 : index
    %c0_0 = arith.constant 0 : index
    %0 = vector.load %arg1[%c0, %c0_0] : memref<16x32xf32, #tpu.memory_space<vmem>>, vector<16x32xf32>
    %c0_1 = arith.constant 0 : index
    %c0_2 = arith.constant 0 : index
    %1 = vector.load %arg2[%c0_1, %c0_2] : memref<16x32xf32, #tpu.memory_space<vmem>>, vector<16x32xf32>
    %2 = arith.addf %0, %1 : vector<16x32xf32>
    %c0_3 = arith.constant 0 : index
    %c0_4 = arith.constant 0 : index
    %3 = vector.load %arg3[%c0_3, %c0_4] : memref<16x32xf32, #tpu.memory_space<vmem>>, vector<16x32xf32>
    %4 = arith.addf %2, %3 : vector<16x32xf32>
    %c0_5 = arith.constant 0 : index
    %c0_6 = arith.constant 0 : index
    %5 = vector.load %arg23[%c0_5, %c0_6] : memref<16x32xf32, #tpu.memory_space<vmem>>, vector<16x32xf32>
    %6 = arith.addf %4, %5 : vector<16x32xf32>
    %c0_7 = arith.constant 0 : index
    %c0_8 = arith.constant 0 : index
    %7 = vector.load %arg4[%c0_7, %c0_8] : memref<1x32xf32, #tpu.memory_space<vmem>>, vector<1x32xf32>
    %c0_9 = arith.constant 0 : index
    %c0_10 = arith.constant 0 : index
    %8 = vector.load %arg5[%c0_9, %c0_10] : memref<1x32xf32, #tpu.memory_space<vmem>>, vector<1x32xf32>
    %cst = arith.constant dense<0.000000e+00> : vector<16xf32>
    %9 = vector.multi_reduction <add>, %6, %cst [1] : vector<16x32xf32> to vector<16xf32>
    %10 = vector.shape_cast %9 : vector<16xf32> to vector<16x1xf32>
    %cst_11 = arith.constant 3.200000e+01 : f32
    %11 = vector.broadcast %cst_11 : f32 to vector<16x1xf32>
    %12 = arith.divf %10, %11 : vector<16x1xf32>
    %13 = vector.broadcast %12 : vector<16x1xf32> to vector<16x32xf32>
    %14 = arith.subf %6, %13 : vector<16x32xf32>
    %15 = arith.mulf %14, %14 : vector<16x32xf32>
    %cst_12 = arith.constant dense<0.000000e+00> : vector<16xf32>
    %16 = vector.multi_reduction <add>, %15, %cst_12 [1] : vector<16x32xf32> to vector<16xf32>
    %17 = vector.shape_cast %16 : vector<16xf32> to vector<16x1xf32>
    %cst_13 = arith.constant 3.200000e+01 : f32
    %18 = vector.broadcast %cst_13 : f32 to vector<16x1xf32>
    %19 = arith.divf %17, %18 : vector<16x1xf32>
    %cst_14 = arith.constant 9.99999996E-13 : f32
    %20 = vector.broadcast %cst_14 : f32 to vector<16x1xf32>
    %21 = arith.addf %19, %20 : vector<16x1xf32>
    %22 = math.rsqrt %21 : vector<16x1xf32>
    %23 = vector.broadcast %22 : vector<16x1xf32> to vector<16x32xf32>
    %24 = arith.mulf %14, %23 : vector<16x32xf32>
    %25 = vector.broadcast %7 : vector<1x32xf32> to vector<16x32xf32>
    %26 = arith.mulf %24, %25 : vector<16x32xf32>
    %27 = vector.broadcast %8 : vector<1x32xf32> to vector<16x32xf32>
    %28 = arith.addf %26, %27 : vector<16x32xf32>
    %29 = arith.truncf %28 : vector<16x32xf32> to vector<16x32xbf16>
    %c0_15 = arith.constant 0 : index
    %c0_16 = arith.constant 0 : index
    %c0_17 = arith.constant 0 : index
    %30 = vector.load %arg6[%c0_15, %c0_16, %c0_17] : memref<2x32x96xbf16, #tpu.memory_space<vmem>>, vector<1x32x96xbf16>
    %31 = vector.shape_cast %30 : vector<1x32x96xbf16> to vector<32x96xbf16>
    %cst_18 = arith.constant dense<0.000000e+00> : vector<16x96xf32>
    %32 = tpu.matmul %29, %31, %cst_18 {dimension_numbers = #tpu.dot_dimension_numbers<[1], [0], [0], [1], [0, 0, 1, 1], [], []>} : vector<16x32xbf16>, vector<32x96xbf16>, vector<16x96xf32> -> vector<16x96xf32>
    %c0_19 = arith.constant 0 : index
    %c0_20 = arith.constant 0 : index
    %c0_21 = arith.constant 0 : index
    %33 = vector.load %arg7[%c0_19, %c0_20, %c0_21] : memref<2x1x96xf32, #tpu.memory_space<vmem>>, vector<1x1x96xf32>
    %34 = vector.shape_cast %33 : vector<1x1x96xf32> to vector<1x96xf32>
    %35 = vector.broadcast %34 : vector<1x96xf32> to vector<16x96xf32>
    %36 = arith.addf %32, %35 : vector<16x96xf32>
    %37 = arith.truncf %36 : vector<16x96xf32> to vector<16x96xbf16>
    %38 = vector.extract_strided_slice %37 {offsets = [0, 0], sizes = [16, 32], strides = [1, 1]} : vector<16x96xbf16> to vector<16x32xbf16>
    %39 = vector.extract_strided_slice %37 {offsets = [0, 32], sizes = [16, 32], strides = [1, 1]} : vector<16x96xbf16> to vector<16x32xbf16>
    %40 = vector.extract_strided_slice %37 {offsets = [0, 64], sizes = [16, 32], strides = [1, 1]} : vector<16x96xbf16> to vector<16x32xbf16>
    %41 = vector.extract_strided_slice %38 {offsets = [0, 0], sizes = [8, 16], strides = [1, 1]} : vector<16x32xbf16> to vector<8x16xbf16>
    %42 = vector.extract_strided_slice %38 {offsets = [0, 16], sizes = [8, 16], strides = [1, 1]} : vector<16x32xbf16> to vector<8x16xbf16>
    %43 = vector.extract_strided_slice %38 {offsets = [8, 0], sizes = [8, 16], strides = [1, 1]} : vector<16x32xbf16> to vector<8x16xbf16>
    %44 = vector.extract_strided_slice %38 {offsets = [8, 16], sizes = [8, 16], strides = [1, 1]} : vector<16x32xbf16> to vector<8x16xbf16>
    %45 = vector.shape_cast %41 : vector<8x16xbf16> to vector<1x8x16xbf16>
    %46 = vector.shape_cast %42 : vector<8x16xbf16> to vector<1x8x16xbf16>
    %47 = vector.shape_cast %43 : vector<8x16xbf16> to vector<1x8x16xbf16>
    %48 = vector.shape_cast %44 : vector<8x16xbf16> to vector<1x8x16xbf16>
    %49 = tpu.concatenate %45, %46, %47, %48 in 0 : vector<1x8x16xbf16>, vector<1x8x16xbf16>, vector<1x8x16xbf16>, vector<1x8x16xbf16> -> vector<4x8x16xbf16>
    %50 = vector.extract_strided_slice %39 {offsets = [0, 0], sizes = [8, 16], strides = [1, 1]} : vector<16x32xbf16> to vector<8x16xbf16>
    %51 = vector.extract_strided_slice %39 {offsets = [0, 16], sizes = [8, 16], strides = [1, 1]} : vector<16x32xbf16> to vector<8x16xbf16>
    %52 = vector.extract_strided_slice %39 {offsets = [8, 0], sizes = [8, 16], strides = [1, 1]} : vector<16x32xbf16> to vector<8x16xbf16>
    %53 = vector.extract_strided_slice %39 {offsets = [8, 16], sizes = [8, 16], strides = [1, 1]} : vector<16x32xbf16> to vector<8x16xbf16>
    %54 = vector.shape_cast %50 : vector<8x16xbf16> to vector<1x8x16xbf16>
    %55 = vector.shape_cast %51 : vector<8x16xbf16> to vector<1x8x16xbf16>
    %56 = vector.shape_cast %52 : vector<8x16xbf16> to vector<1x8x16xbf16>
    %57 = vector.shape_cast %53 : vector<8x16xbf16> to vector<1x8x16xbf16>
    %58 = tpu.concatenate %54, %55, %56, %57 in 0 : vector<1x8x16xbf16>, vector<1x8x16xbf16>, vector<1x8x16xbf16>, vector<1x8x16xbf16> -> vector<4x8x16xbf16>
    %59 = vector.extract_strided_slice %40 {offsets = [0, 0], sizes = [8, 16], strides = [1, 1]} : vector<16x32xbf16> to vector<8x16xbf16>
    %60 = vector.extract_strided_slice %40 {offsets = [0, 16], sizes = [8, 16], strides = [1, 1]} : vector<16x32xbf16> to vector<8x16xbf16>
    %61 = vector.extract_strided_slice %40 {offsets = [8, 0], sizes = [8, 16], strides = [1, 1]} : vector<16x32xbf16> to vector<8x16xbf16>
    %62 = vector.extract_strided_slice %40 {offsets = [8, 16], sizes = [8, 16], strides = [1, 1]} : vector<16x32xbf16> to vector<8x16xbf16>
    %63 = vector.shape_cast %59 : vector<8x16xbf16> to vector<1x8x16xbf16>
    %64 = vector.shape_cast %60 : vector<8x16xbf16> to vector<1x8x16xbf16>
    %65 = vector.shape_cast %61 : vector<8x16xbf16> to vector<1x8x16xbf16>
    %66 = vector.shape_cast %62 : vector<8x16xbf16> to vector<1x8x16xbf16>
    %67 = tpu.concatenate %63, %64, %65, %66 in 0 : vector<1x8x16xbf16>, vector<1x8x16xbf16>, vector<1x8x16xbf16>, vector<1x8x16xbf16> -> vector<4x8x16xbf16>
    "tpu.trace_start"() <{level = 10 : i32, message = "bqd,bkd->bqk"}> : () -> ()
    %cst_22 = arith.constant dense<0.000000e+00> : vector<4x8x8xf32>
    %68 = tpu.matmul %49, %58, %cst_22 {dimension_numbers = #tpu.dot_dimension_numbers<[2], [2], [1], [1], [0, 0, 0, 1, 1, 1], [0], [0]>} : vector<4x8x16xbf16>, vector<4x8x16xbf16>, vector<4x8x8xf32> -> vector<4x8x8xf32>
    "tpu.trace_stop"() : () -> ()
    %cst_23 = arith.constant dense<0xFF800000> : vector<4x8xf32>
    %69 = vector.multi_reduction <maximumf>, %68, %cst_23 [2] : vector<4x8x8xf32> to vector<4x8xf32>
    %70 = vector.shape_cast %69 : vector<4x8xf32> to vector<4x8x1xf32>
    %71 = vector.broadcast %70 : vector<4x8x1xf32> to vector<4x8x8xf32>
    %72 = arith.subf %68, %71 : vector<4x8x8xf32>
    %73 = math.exp %72 : vector<4x8x8xf32>
    %cst_24 = arith.constant dense<0.000000e+00> : vector<4x8xf32>
    %74 = vector.multi_reduction <add>, %73, %cst_24 [2] : vector<4x8x8xf32> to vector<4x8xf32>
    %75 = vector.shape_cast %74 : vector<4x8xf32> to vector<4x8x1xf32>
    %76 = tpu.reciprocal %75 {approx = true} : vector<4x8x1xf32> -> vector<4x8x1xf32>
    %77 = vector.broadcast %76 : vector<4x8x1xf32> to vector<4x8x8xf32>
    %78 = arith.mulf %73, %77 : vector<4x8x8xf32>
    %79 = arith.truncf %78 : vector<4x8x8xf32> to vector<4x8x8xbf16>
    "tpu.trace_start"() <{level = 10 : i32, message = "bqk,bkd->bqd"}> : () -> ()
    %cst_25 = arith.constant dense<0.000000e+00> : vector<4x8x16xf32>
    %80 = tpu.matmul %79, %67, %cst_25 {dimension_numbers = #tpu.dot_dimension_numbers<[2], [1], [1], [2], [0, 0, 0, 1, 1, 2], [0], [0]>} : vector<4x8x8xbf16>, vector<4x8x16xbf16>, vector<4x8x16xf32> -> vector<4x8x16xf32>
    "tpu.trace_stop"() : () -> ()
    %81 = vector.extract_strided_slice %80 {offsets = [0, 0, 0], sizes = [1, 8, 16], strides = [1, 1, 1]} : vector<4x8x16xf32> to vector<1x8x16xf32>
    %82 = vector.shape_cast %81 : vector<1x8x16xf32> to vector<8x16xf32>
    %83 = vector.extract_strided_slice %80 {offsets = [1, 0, 0], sizes = [1, 8, 16], strides = [1, 1, 1]} : vector<4x8x16xf32> to vector<1x8x16xf32>
    %84 = vector.shape_cast %83 : vector<1x8x16xf32> to vector<8x16xf32>
    %85 = tpu.concatenate %82, %84 in 1 : vector<8x16xf32>, vector<8x16xf32> -> vector<8x32xf32>
    %86 = vector.extract_strided_slice %80 {offsets = [2, 0, 0], sizes = [1, 8, 16], strides = [1, 1, 1]} : vector<4x8x16xf32> to vector<1x8x16xf32>
    %87 = vector.shape_cast %86 : vector<1x8x16xf32> to vector<8x16xf32>
    %88 = vector.extract_strided_slice %80 {offsets = [3, 0, 0], sizes = [1, 8, 16], strides = [1, 1, 1]} : vector<4x8x16xf32> to vector<1x8x16xf32>
    %89 = vector.shape_cast %88 : vector<1x8x16xf32> to vector<8x16xf32>
    %90 = tpu.concatenate %87, %89 in 1 : vector<8x16xf32>, vector<8x16xf32> -> vector<8x32xf32>
    %91 = tpu.concatenate %85, %90 in 0 : vector<8x32xf32>, vector<8x32xf32> -> vector<16x32xf32>
    %92 = arith.truncf %91 : vector<16x32xf32> to vector<16x32xbf16>
    %c0_26 = arith.constant 0 : index
    %c0_27 = arith.constant 0 : index
    %c0_28 = arith.constant 0 : index
    %93 = vector.load %arg8[%c0_26, %c0_27, %c0_28] : memref<2x32x32xbf16, #tpu.memory_space<vmem>>, vector<1x32x32xbf16>
    %94 = vector.shape_cast %93 : vector<1x32x32xbf16> to vector<32x32xbf16>
    %cst_29 = arith.constant dense<0.000000e+00> : vector<16x32xf32>
    %95 = tpu.matmul %92, %94, %cst_29 {dimension_numbers = #tpu.dot_dimension_numbers<[1], [0], [0], [1], [0, 0, 1, 1], [], []>} : vector<16x32xbf16>, vector<32x32xbf16>, vector<16x32xf32> -> vector<16x32xf32>
    %c0_30 = arith.constant 0 : index
    %c0_31 = arith.constant 0 : index
    %c0_32 = arith.constant 0 : index
    %96 = vector.load %arg9[%c0_30, %c0_31, %c0_32] : memref<2x1x32xf32, #tpu.memory_space<vmem>>, vector<1x1x32xf32>
    %97 = vector.shape_cast %96 : vector<1x1x32xf32> to vector<1x32xf32>
    %98 = vector.broadcast %97 : vector<1x32xf32> to vector<16x32xf32>
    %99 = arith.addf %95, %98 : vector<16x32xf32>
    %100 = arith.addf %99, %28 : vector<16x32xf32>
    %c0_33 = arith.constant 0 : index
    %c0_34 = arith.constant 0 : index
    %c0_35 = arith.constant 0 : index
    %101 = vector.load %arg10[%c0_33, %c0_34, %c0_35] : memref<2x1x32xf32, #tpu.memory_space<vmem>>, vector<1x1x32xf32>
    %102 = vector.shape_cast %101 : vector<1x1x32xf32> to vector<1x32xf32>
    %c0_36 = arith.constant 0 : index
    %c0_37 = arith.constant 0 : index
    %c0_38 = arith.constant 0 : index
    %103 = vector.load %arg11[%c0_36, %c0_37, %c0_38] : memref<2x1x32xf32, #tpu.memory_space<vmem>>, vector<1x1x32xf32>
    %104 = vector.shape_cast %103 : vector<1x1x32xf32> to vector<1x32xf32>
    %cst_39 = arith.constant dense<0.000000e+00> : vector<16xf32>
    %105 = vector.multi_reduction <add>, %100, %cst_39 [1] : vector<16x32xf32> to vector<16xf32>
    %106 = vector.shape_cast %105 : vector<16xf32> to vector<16x1xf32>
    %cst_40 = arith.constant 3.200000e+01 : f32
    %107 = vector.broadcast %cst_40 : f32 to vector<16x1xf32>
    %108 = arith.divf %106, %107 : vector<16x1xf32>
    %109 = vector.broadcast %108 : vector<16x1xf32> to vector<16x32xf32>
    %110 = arith.subf %100, %109 : vector<16x32xf32>
    %111 = arith.mulf %110, %110 : vector<16x32xf32>
    %cst_41 = arith.constant dense<0.000000e+00> : vector<16xf32>
    %112 = vector.multi_reduction <add>, %111, %cst_41 [1] : vector<16x32xf32> to vector<16xf32>
    %113 = vector.shape_cast %112 : vector<16xf32> to vector<16x1xf32>
    %cst_42 = arith.constant 3.200000e+01 : f32
    %114 = vector.broadcast %cst_42 : f32 to vector<16x1xf32>
    %115 = arith.divf %113, %114 : vector<16x1xf32>
    %cst_43 = arith.constant 9.99999996E-13 : f32
    %116 = vector.broadcast %cst_43 : f32 to vector<16x1xf32>
    %117 = arith.addf %115, %116 : vector<16x1xf32>
    %118 = math.rsqrt %117 : vector<16x1xf32>
    %119 = vector.broadcast %118 : vector<16x1xf32> to vector<16x32xf32>
    %120 = arith.mulf %110, %119 : vector<16x32xf32>
    %121 = vector.broadcast %102 : vector<1x32xf32> to vector<16x32xf32>
    %122 = arith.mulf %120, %121 : vector<16x32xf32>
    %123 = vector.broadcast %104 : vector<1x32xf32> to vector<16x32xf32>
    %124 = arith.addf %122, %123 : vector<16x32xf32>
    %125 = arith.truncf %124 : vector<16x32xf32> to vector<16x32xbf16>
    %c0_44 = arith.constant 0 : index
    %c0_45 = arith.constant 0 : index
    %c0_46 = arith.constant 0 : index
    %126 = vector.load %arg12[%c0_44, %c0_45, %c0_46] : memref<2x32x64xbf16, #tpu.memory_space<vmem>>, vector<1x32x64xbf16>
    %127 = vector.shape_cast %126 : vector<1x32x64xbf16> to vector<32x64xbf16>
    %cst_47 = arith.constant dense<0.000000e+00> : vector<16x64xf32>
    %128 = tpu.matmul %125, %127, %cst_47 {dimension_numbers = #tpu.dot_dimension_numbers<[1], [0], [0], [1], [0, 0, 1, 1], [], []>} : vector<16x32xbf16>, vector<32x64xbf16>, vector<16x64xf32> -> vector<16x64xf32>
    %c0_48 = arith.constant 0 : index
    %c0_49 = arith.constant 0 : index
    %c0_50 = arith.constant 0 : index
    %129 = vector.load %arg13[%c0_48, %c0_49, %c0_50] : memref<2x1x64xf32, #tpu.memory_space<vmem>>, vector<1x1x64xf32>
    %130 = vector.shape_cast %129 : vector<1x1x64xf32> to vector<1x64xf32>
    %131 = vector.broadcast %130 : vector<1x64xf32> to vector<16x64xf32>
    %132 = arith.addf %128, %131 : vector<16x64xf32>
    %cst_51 = arith.constant 5.000000e-01 : f32
    %133 = vector.broadcast %cst_51 : f32 to vector<16x64xf32>
    %134 = arith.mulf %133, %132 : vector<16x64xf32>
    %cst_52 = arith.constant 4.471500e-02 : f32
    %135 = vector.broadcast %cst_52 : f32 to vector<16x64xf32>
    %136 = arith.mulf %135, %132 : vector<16x64xf32>
    %137 = arith.mulf %136, %132 : vector<16x64xf32>
    %138 = arith.mulf %137, %132 : vector<16x64xf32>
    %139 = arith.addf %132, %138 : vector<16x64xf32>
    %cst_53 = arith.constant 0.797884583 : f32
    %140 = vector.broadcast %cst_53 : f32 to vector<16x64xf32>
    %141 = arith.mulf %140, %139 : vector<16x64xf32>
    %142 = math.tanh %141 : vector<16x64xf32>
    %cst_54 = arith.constant 1.000000e+00 : f32
    %143 = vector.broadcast %cst_54 : f32 to vector<16x64xf32>
    %144 = arith.addf %143, %142 : vector<16x64xf32>
    %145 = arith.mulf %134, %144 : vector<16x64xf32>
    %146 = arith.truncf %145 : vector<16x64xf32> to vector<16x64xbf16>
    %c0_55 = arith.constant 0 : index
    %c0_56 = arith.constant 0 : index
    %c0_57 = arith.constant 0 : index
    %147 = vector.load %arg14[%c0_55, %c0_56, %c0_57] : memref<2x64x32xbf16, #tpu.memory_space<vmem>>, vector<1x64x32xbf16>
    %148 = vector.shape_cast %147 : vector<1x64x32xbf16> to vector<64x32xbf16>
    %cst_58 = arith.constant dense<0.000000e+00> : vector<16x32xf32>
    %149 = tpu.matmul %146, %148, %cst_58 {dimension_numbers = #tpu.dot_dimension_numbers<[1], [0], [0], [1], [0, 0, 1, 1], [], []>} : vector<16x64xbf16>, vector<64x32xbf16>, vector<16x32xf32> -> vector<16x32xf32>
    %c0_59 = arith.constant 0 : index
    %c0_60 = arith.constant 0 : index
    %c0_61 = arith.constant 0 : index
    %150 = vector.load %arg15[%c0_59, %c0_60, %c0_61] : memref<2x1x32xf32, #tpu.memory_space<vmem>>, vector<1x1x32xf32>
    %151 = vector.shape_cast %150 : vector<1x1x32xf32> to vector<1x32xf32>
    %152 = vector.broadcast %151 : vector<1x32xf32> to vector<16x32xf32>
    %153 = arith.addf %149, %152 : vector<16x32xf32>
    %154 = arith.addf %153, %124 : vector<16x32xf32>
    %c0_62 = arith.constant 0 : index
    %c0_63 = arith.constant 0 : index
    %c0_64 = arith.constant 0 : index
    %155 = vector.load %arg16[%c0_62, %c0_63, %c0_64] : memref<2x1x32xf32, #tpu.memory_space<vmem>>, vector<1x1x32xf32>
    %156 = vector.shape_cast %155 : vector<1x1x32xf32> to vector<1x32xf32>
    %c0_65 = arith.constant 0 : index
    %c0_66 = arith.constant 0 : index
    %c0_67 = arith.constant 0 : index
    %157 = vector.load %arg17[%c0_65, %c0_66, %c0_67] : memref<2x1x32xf32, #tpu.memory_space<vmem>>, vector<1x1x32xf32>
    %158 = vector.shape_cast %157 : vector<1x1x32xf32> to vector<1x32xf32>
    %cst_68 = arith.constant dense<0.000000e+00> : vector<16xf32>
    %159 = vector.multi_reduction <add>, %154, %cst_68 [1] : vector<16x32xf32> to vector<16xf32>
    %160 = vector.shape_cast %159 : vector<16xf32> to vector<16x1xf32>
    %cst_69 = arith.constant 3.200000e+01 : f32
    %161 = vector.broadcast %cst_69 : f32 to vector<16x1xf32>
    %162 = arith.divf %160, %161 : vector<16x1xf32>
    %163 = vector.broadcast %162 : vector<16x1xf32> to vector<16x32xf32>
    %164 = arith.subf %154, %163 : vector<16x32xf32>
    %165 = arith.mulf %164, %164 : vector<16x32xf32>
    %cst_70 = arith.constant dense<0.000000e+00> : vector<16xf32>
    %166 = vector.multi_reduction <add>, %165, %cst_70 [1] : vector<16x32xf32> to vector<16xf32>
    %167 = vector.shape_cast %166 : vector<16xf32> to vector<16x1xf32>
    %cst_71 = arith.constant 3.200000e+01 : f32
    %168 = vector.broadcast %cst_71 : f32 to vector<16x1xf32>
    %169 = arith.divf %167, %168 : vector<16x1xf32>
    %cst_72 = arith.constant 9.99999996E-13 : f32
    %170 = vector.broadcast %cst_72 : f32 to vector<16x1xf32>
    %171 = arith.addf %169, %170 : vector<16x1xf32>
    %172 = math.rsqrt %171 : vector<16x1xf32>
    %173 = vector.broadcast %172 : vector<16x1xf32> to vector<16x32xf32>
    %174 = arith.mulf %164, %173 : vector<16x32xf32>
    %175 = vector.broadcast %156 : vector<1x32xf32> to vector<16x32xf32>
    %176 = arith.mulf %174, %175 : vector<16x32xf32>
    %177 = vector.broadcast %158 : vector<1x32xf32> to vector<16x32xf32>
    %178 = arith.addf %176, %177 : vector<16x32xf32>
    %179 = arith.truncf %178 : vector<16x32xf32> to vector<16x32xbf16>
    %c1 = arith.constant 1 : index
    %c0_73 = arith.constant 0 : index
    %c0_74 = arith.constant 0 : index
    %180 = vector.load %arg6[%c1, %c0_73, %c0_74] : memref<2x32x96xbf16, #tpu.memory_space<vmem>>, vector<1x32x96xbf16>
    %181 = vector.shape_cast %180 : vector<1x32x96xbf16> to vector<32x96xbf16>
    %cst_75 = arith.constant dense<0.000000e+00> : vector<16x96xf32>
    %182 = tpu.matmul %179, %181, %cst_75 {dimension_numbers = #tpu.dot_dimension_numbers<[1], [0], [0], [1], [0, 0, 1, 1], [], []>} : vector<16x32xbf16>, vector<32x96xbf16>, vector<16x96xf32> -> vector<16x96xf32>
    %c1_76 = arith.constant 1 : index
    %c0_77 = arith.constant 0 : index
    %c0_78 = arith.constant 0 : index
    %183 = vector.load %arg7[%c1_76, %c0_77, %c0_78] : memref<2x1x96xf32, #tpu.memory_space<vmem>>, vector<1x1x96xf32>
    %184 = vector.shape_cast %183 : vector<1x1x96xf32> to vector<1x96xf32>
    %185 = vector.broadcast %184 : vector<1x96xf32> to vector<16x96xf32>
    %186 = arith.addf %182, %185 : vector<16x96xf32>
    %187 = arith.truncf %186 : vector<16x96xf32> to vector<16x96xbf16>
    %188 = vector.extract_strided_slice %187 {offsets = [0, 0], sizes = [16, 32], strides = [1, 1]} : vector<16x96xbf16> to vector<16x32xbf16>
    %189 = vector.extract_strided_slice %187 {offsets = [0, 32], sizes = [16, 32], strides = [1, 1]} : vector<16x96xbf16> to vector<16x32xbf16>
    %190 = vector.extract_strided_slice %187 {offsets = [0, 64], sizes = [16, 32], strides = [1, 1]} : vector<16x96xbf16> to vector<16x32xbf16>
    %191 = vector.extract_strided_slice %188 {offsets = [0, 0], sizes = [8, 16], strides = [1, 1]} : vector<16x32xbf16> to vector<8x16xbf16>
    %192 = vector.extract_strided_slice %188 {offsets = [0, 16], sizes = [8, 16], strides = [1, 1]} : vector<16x32xbf16> to vector<8x16xbf16>
    %193 = vector.extract_strided_slice %188 {offsets = [8, 0], sizes = [8, 16], strides = [1, 1]} : vector<16x32xbf16> to vector<8x16xbf16>
    %194 = vector.extract_strided_slice %188 {offsets = [8, 16], sizes = [8, 16], strides = [1, 1]} : vector<16x32xbf16> to vector<8x16xbf16>
    %195 = vector.shape_cast %191 : vector<8x16xbf16> to vector<1x8x16xbf16>
    %196 = vector.shape_cast %192 : vector<8x16xbf16> to vector<1x8x16xbf16>
    %197 = vector.shape_cast %193 : vector<8x16xbf16> to vector<1x8x16xbf16>
    %198 = vector.shape_cast %194 : vector<8x16xbf16> to vector<1x8x16xbf16>
    %199 = tpu.concatenate %195, %196, %197, %198 in 0 : vector<1x8x16xbf16>, vector<1x8x16xbf16>, vector<1x8x16xbf16>, vector<1x8x16xbf16> -> vector<4x8x16xbf16>
    %200 = vector.extract_strided_slice %189 {offsets = [0, 0], sizes = [8, 16], strides = [1, 1]} : vector<16x32xbf16> to vector<8x16xbf16>
    %201 = vector.extract_strided_slice %189 {offsets = [0, 16], sizes = [8, 16], strides = [1, 1]} : vector<16x32xbf16> to vector<8x16xbf16>
    %202 = vector.extract_strided_slice %189 {offsets = [8, 0], sizes = [8, 16], strides = [1, 1]} : vector<16x32xbf16> to vector<8x16xbf16>
    %203 = vector.extract_strided_slice %189 {offsets = [8, 16], sizes = [8, 16], strides = [1, 1]} : vector<16x32xbf16> to vector<8x16xbf16>
    %204 = vector.shape_cast %200 : vector<8x16xbf16> to vector<1x8x16xbf16>
    %205 = vector.shape_cast %201 : vector<8x16xbf16> to vector<1x8x16xbf16>
    %206 = vector.shape_cast %202 : vector<8x16xbf16> to vector<1x8x16xbf16>
    %207 = vector.shape_cast %203 : vector<8x16xbf16> to vector<1x8x16xbf16>
    %208 = tpu.concatenate %204, %205, %206, %207 in 0 : vector<1x8x16xbf16>, vector<1x8x16xbf16>, vector<1x8x16xbf16>, vector<1x8x16xbf16> -> vector<4x8x16xbf16>
    %209 = vector.extract_strided_slice %190 {offsets = [0, 0], sizes = [8, 16], strides = [1, 1]} : vector<16x32xbf16> to vector<8x16xbf16>
    %210 = vector.extract_strided_slice %190 {offsets = [0, 16], sizes = [8, 16], strides = [1, 1]} : vector<16x32xbf16> to vector<8x16xbf16>
    %211 = vector.extract_strided_slice %190 {offsets = [8, 0], sizes = [8, 16], strides = [1, 1]} : vector<16x32xbf16> to vector<8x16xbf16>
    %212 = vector.extract_strided_slice %190 {offsets = [8, 16], sizes = [8, 16], strides = [1, 1]} : vector<16x32xbf16> to vector<8x16xbf16>
    %213 = vector.shape_cast %209 : vector<8x16xbf16> to vector<1x8x16xbf16>
    %214 = vector.shape_cast %210 : vector<8x16xbf16> to vector<1x8x16xbf16>
    %215 = vector.shape_cast %211 : vector<8x16xbf16> to vector<1x8x16xbf16>
    %216 = vector.shape_cast %212 : vector<8x16xbf16> to vector<1x8x16xbf16>
    %217 = tpu.concatenate %213, %214, %215, %216 in 0 : vector<1x8x16xbf16>, vector<1x8x16xbf16>, vector<1x8x16xbf16>, vector<1x8x16xbf16> -> vector<4x8x16xbf16>
    "tpu.trace_start"() <{level = 10 : i32, message = "bqd,bkd->bqk"}> : () -> ()
    %cst_79 = arith.constant dense<0.000000e+00> : vector<4x8x8xf32>
    %218 = tpu.matmul %199, %208, %cst_79 {dimension_numbers = #tpu.dot_dimension_numbers<[2], [2], [1], [1], [0, 0, 0, 1, 1, 1], [0], [0]>} : vector<4x8x16xbf16>, vector<4x8x16xbf16>, vector<4x8x8xf32> -> vector<4x8x8xf32>
    "tpu.trace_stop"() : () -> ()
    %cst_80 = arith.constant dense<0xFF800000> : vector<4x8xf32>
    %219 = vector.multi_reduction <maximumf>, %218, %cst_80 [2] : vector<4x8x8xf32> to vector<4x8xf32>
    %220 = vector.shape_cast %219 : vector<4x8xf32> to vector<4x8x1xf32>
    %221 = vector.broadcast %220 : vector<4x8x1xf32> to vector<4x8x8xf32>
    %222 = arith.subf %218, %221 : vector<4x8x8xf32>
    %223 = math.exp %222 : vector<4x8x8xf32>
    %cst_81 = arith.constant dense<0.000000e+00> : vector<4x8xf32>
    %224 = vector.multi_reduction <add>, %223, %cst_81 [2] : vector<4x8x8xf32> to vector<4x8xf32>
    %225 = vector.shape_cast %224 : vector<4x8xf32> to vector<4x8x1xf32>
    %226 = tpu.reciprocal %225 {approx = true} : vector<4x8x1xf32> -> vector<4x8x1xf32>
    %227 = vector.broadcast %226 : vector<4x8x1xf32> to vector<4x8x8xf32>
    %228 = arith.mulf %223, %227 : vector<4x8x8xf32>
    %229 = arith.truncf %228 : vector<4x8x8xf32> to vector<4x8x8xbf16>
    "tpu.trace_start"() <{level = 10 : i32, message = "bqk,bkd->bqd"}> : () -> ()
    %cst_82 = arith.constant dense<0.000000e+00> : vector<4x8x16xf32>
    %230 = tpu.matmul %229, %217, %cst_82 {dimension_numbers = #tpu.dot_dimension_numbers<[2], [1], [1], [2], [0, 0, 0, 1, 1, 2], [0], [0]>} : vector<4x8x8xbf16>, vector<4x8x16xbf16>, vector<4x8x16xf32> -> vector<4x8x16xf32>
    "tpu.trace_stop"() : () -> ()
    %231 = vector.extract_strided_slice %230 {offsets = [0, 0, 0], sizes = [1, 8, 16], strides = [1, 1, 1]} : vector<4x8x16xf32> to vector<1x8x16xf32>
    %232 = vector.shape_cast %231 : vector<1x8x16xf32> to vector<8x16xf32>
    %233 = vector.extract_strided_slice %230 {offsets = [1, 0, 0], sizes = [1, 8, 16], strides = [1, 1, 1]} : vector<4x8x16xf32> to vector<1x8x16xf32>
    %234 = vector.shape_cast %233 : vector<1x8x16xf32> to vector<8x16xf32>
    %235 = tpu.concatenate %232, %234 in 1 : vector<8x16xf32>, vector<8x16xf32> -> vector<8x32xf32>
    %236 = vector.extract_strided_slice %230 {offsets = [2, 0, 0], sizes = [1, 8, 16], strides = [1, 1, 1]} : vector<4x8x16xf32> to vector<1x8x16xf32>
    %237 = vector.shape_cast %236 : vector<1x8x16xf32> to vector<8x16xf32>
    %238 = vector.extract_strided_slice %230 {offsets = [3, 0, 0], sizes = [1, 8, 16], strides = [1, 1, 1]} : vector<4x8x16xf32> to vector<1x8x16xf32>
    %239 = vector.shape_cast %238 : vector<1x8x16xf32> to vector<8x16xf32>
    %240 = tpu.concatenate %237, %239 in 1 : vector<8x16xf32>, vector<8x16xf32> -> vector<8x32xf32>
    %241 = tpu.concatenate %235, %240 in 0 : vector<8x32xf32>, vector<8x32xf32> -> vector<16x32xf32>
    %242 = arith.truncf %241 : vector<16x32xf32> to vector<16x32xbf16>
    %c1_83 = arith.constant 1 : index
    %c0_84 = arith.constant 0 : index
    %c0_85 = arith.constant 0 : index
    %243 = vector.load %arg8[%c1_83, %c0_84, %c0_85] : memref<2x32x32xbf16, #tpu.memory_space<vmem>>, vector<1x32x32xbf16>
    %244 = vector.shape_cast %243 : vector<1x32x32xbf16> to vector<32x32xbf16>
    %cst_86 = arith.constant dense<0.000000e+00> : vector<16x32xf32>
    %245 = tpu.matmul %242, %244, %cst_86 {dimension_numbers = #tpu.dot_dimension_numbers<[1], [0], [0], [1], [0, 0, 1, 1], [], []>} : vector<16x32xbf16>, vector<32x32xbf16>, vector<16x32xf32> -> vector<16x32xf32>
    %c1_87 = arith.constant 1 : index
    %c0_88 = arith.constant 0 : index
    %c0_89 = arith.constant 0 : index
    %246 = vector.load %arg9[%c1_87, %c0_88, %c0_89] : memref<2x1x32xf32, #tpu.memory_space<vmem>>, vector<1x1x32xf32>
    %247 = vector.shape_cast %246 : vector<1x1x32xf32> to vector<1x32xf32>
    %248 = vector.broadcast %247 : vector<1x32xf32> to vector<16x32xf32>
    %249 = arith.addf %245, %248 : vector<16x32xf32>
    %250 = arith.addf %249, %178 : vector<16x32xf32>
    %c1_90 = arith.constant 1 : index
    %c0_91 = arith.constant 0 : index
    %c0_92 = arith.constant 0 : index
    %251 = vector.load %arg10[%c1_90, %c0_91, %c0_92] : memref<2x1x32xf32, #tpu.memory_space<vmem>>, vector<1x1x32xf32>
    %252 = vector.shape_cast %251 : vector<1x1x32xf32> to vector<1x32xf32>
    %c1_93 = arith.constant 1 : index
    %c0_94 = arith.constant 0 : index
    %c0_95 = arith.constant 0 : index
    %253 = vector.load %arg11[%c1_93, %c0_94, %c0_95] : memref<2x1x32xf32, #tpu.memory_space<vmem>>, vector<1x1x32xf32>
    %254 = vector.shape_cast %253 : vector<1x1x32xf32> to vector<1x32xf32>
    %cst_96 = arith.constant dense<0.000000e+00> : vector<16xf32>
    %255 = vector.multi_reduction <add>, %250, %cst_96 [1] : vector<16x32xf32> to vector<16xf32>
    %256 = vector.shape_cast %255 : vector<16xf32> to vector<16x1xf32>
    %cst_97 = arith.constant 3.200000e+01 : f32
    %257 = vector.broadcast %cst_97 : f32 to vector<16x1xf32>
    %258 = arith.divf %256, %257 : vector<16x1xf32>
    %259 = vector.broadcast %258 : vector<16x1xf32> to vector<16x32xf32>
    %260 = arith.subf %250, %259 : vector<16x32xf32>
    %261 = arith.mulf %260, %260 : vector<16x32xf32>
    %cst_98 = arith.constant dense<0.000000e+00> : vector<16xf32>
    %262 = vector.multi_reduction <add>, %261, %cst_98 [1] : vector<16x32xf32> to vector<16xf32>
    %263 = vector.shape_cast %262 : vector<16xf32> to vector<16x1xf32>
    %cst_99 = arith.constant 3.200000e+01 : f32
    %264 = vector.broadcast %cst_99 : f32 to vector<16x1xf32>
    %265 = arith.divf %263, %264 : vector<16x1xf32>
    %cst_100 = arith.constant 9.99999996E-13 : f32
    %266 = vector.broadcast %cst_100 : f32 to vector<16x1xf32>
    %267 = arith.addf %265, %266 : vector<16x1xf32>
    %268 = math.rsqrt %267 : vector<16x1xf32>
    %269 = vector.broadcast %268 : vector<16x1xf32> to vector<16x32xf32>
    %270 = arith.mulf %260, %269 : vector<16x32xf32>
    %271 = vector.broadcast %252 : vector<1x32xf32> to vector<16x32xf32>
    %272 = arith.mulf %270, %271 : vector<16x32xf32>
    %273 = vector.broadcast %254 : vector<1x32xf32> to vector<16x32xf32>
    %274 = arith.addf %272, %273 : vector<16x32xf32>
    %275 = arith.truncf %274 : vector<16x32xf32> to vector<16x32xbf16>
    %c1_101 = arith.constant 1 : index
    %c0_102 = arith.constant 0 : index
    %c0_103 = arith.constant 0 : index
    %276 = vector.load %arg12[%c1_101, %c0_102, %c0_103] : memref<2x32x64xbf16, #tpu.memory_space<vmem>>, vector<1x32x64xbf16>
    %277 = vector.shape_cast %276 : vector<1x32x64xbf16> to vector<32x64xbf16>
    %cst_104 = arith.constant dense<0.000000e+00> : vector<16x64xf32>
    %278 = tpu.matmul %275, %277, %cst_104 {dimension_numbers = #tpu.dot_dimension_numbers<[1], [0], [0], [1], [0, 0, 1, 1], [], []>} : vector<16x32xbf16>, vector<32x64xbf16>, vector<16x64xf32> -> vector<16x64xf32>
    %c1_105 = arith.constant 1 : index
    %c0_106 = arith.constant 0 : index
    %c0_107 = arith.constant 0 : index
    %279 = vector.load %arg13[%c1_105, %c0_106, %c0_107] : memref<2x1x64xf32, #tpu.memory_space<vmem>>, vector<1x1x64xf32>
    %280 = vector.shape_cast %279 : vector<1x1x64xf32> to vector<1x64xf32>
    %281 = vector.broadcast %280 : vector<1x64xf32> to vector<16x64xf32>
    %282 = arith.addf %278, %281 : vector<16x64xf32>
    %cst_108 = arith.constant 5.000000e-01 : f32
    %283 = vector.broadcast %cst_108 : f32 to vector<16x64xf32>
    %284 = arith.mulf %283, %282 : vector<16x64xf32>
    %cst_109 = arith.constant 4.471500e-02 : f32
    %285 = vector.broadcast %cst_109 : f32 to vector<16x64xf32>
    %286 = arith.mulf %285, %282 : vector<16x64xf32>
    %287 = arith.mulf %286, %282 : vector<16x64xf32>
    %288 = arith.mulf %287, %282 : vector<16x64xf32>
    %289 = arith.addf %282, %288 : vector<16x64xf32>
    %cst_110 = arith.constant 0.797884583 : f32
    %290 = vector.broadcast %cst_110 : f32 to vector<16x64xf32>
    %291 = arith.mulf %290, %289 : vector<16x64xf32>
    %292 = math.tanh %291 : vector<16x64xf32>
    %cst_111 = arith.constant 1.000000e+00 : f32
    %293 = vector.broadcast %cst_111 : f32 to vector<16x64xf32>
    %294 = arith.addf %293, %292 : vector<16x64xf32>
    %295 = arith.mulf %284, %294 : vector<16x64xf32>
    %296 = arith.truncf %295 : vector<16x64xf32> to vector<16x64xbf16>
    %c1_112 = arith.constant 1 : index
    %c0_113 = arith.constant 0 : index
    %c0_114 = arith.constant 0 : index
    %297 = vector.load %arg14[%c1_112, %c0_113, %c0_114] : memref<2x64x32xbf16, #tpu.memory_space<vmem>>, vector<1x64x32xbf16>
    %298 = vector.shape_cast %297 : vector<1x64x32xbf16> to vector<64x32xbf16>
    %cst_115 = arith.constant dense<0.000000e+00> : vector<16x32xf32>
    %299 = tpu.matmul %296, %298, %cst_115 {dimension_numbers = #tpu.dot_dimension_numbers<[1], [0], [0], [1], [0, 0, 1, 1], [], []>} : vector<16x64xbf16>, vector<64x32xbf16>, vector<16x32xf32> -> vector<16x32xf32>
    %c1_116 = arith.constant 1 : index
    %c0_117 = arith.constant 0 : index
    %c0_118 = arith.constant 0 : index
    %300 = vector.load %arg15[%c1_116, %c0_117, %c0_118] : memref<2x1x32xf32, #tpu.memory_space<vmem>>, vector<1x1x32xf32>
    %301 = vector.shape_cast %300 : vector<1x1x32xf32> to vector<1x32xf32>
    %302 = vector.broadcast %301 : vector<1x32xf32> to vector<16x32xf32>
    %303 = arith.addf %299, %302 : vector<16x32xf32>
    %304 = arith.addf %303, %274 : vector<16x32xf32>
    %c1_119 = arith.constant 1 : index
    %c0_120 = arith.constant 0 : index
    %c0_121 = arith.constant 0 : index
    %305 = vector.load %arg16[%c1_119, %c0_120, %c0_121] : memref<2x1x32xf32, #tpu.memory_space<vmem>>, vector<1x1x32xf32>
    %306 = vector.shape_cast %305 : vector<1x1x32xf32> to vector<1x32xf32>
    %c1_122 = arith.constant 1 : index
    %c0_123 = arith.constant 0 : index
    %c0_124 = arith.constant 0 : index
    %307 = vector.load %arg17[%c1_122, %c0_123, %c0_124] : memref<2x1x32xf32, #tpu.memory_space<vmem>>, vector<1x1x32xf32>
    %308 = vector.shape_cast %307 : vector<1x1x32xf32> to vector<1x32xf32>
    %cst_125 = arith.constant dense<0.000000e+00> : vector<16xf32>
    %309 = vector.multi_reduction <add>, %304, %cst_125 [1] : vector<16x32xf32> to vector<16xf32>
    %310 = vector.shape_cast %309 : vector<16xf32> to vector<16x1xf32>
    %cst_126 = arith.constant 3.200000e+01 : f32
    %311 = vector.broadcast %cst_126 : f32 to vector<16x1xf32>
    %312 = arith.divf %310, %311 : vector<16x1xf32>
    %313 = vector.broadcast %312 : vector<16x1xf32> to vector<16x32xf32>
    %314 = arith.subf %304, %313 : vector<16x32xf32>
    %315 = arith.mulf %314, %314 : vector<16x32xf32>
    %cst_127 = arith.constant dense<0.000000e+00> : vector<16xf32>
    %316 = vector.multi_reduction <add>, %315, %cst_127 [1] : vector<16x32xf32> to vector<16xf32>
    %317 = vector.shape_cast %316 : vector<16xf32> to vector<16x1xf32>
    %cst_128 = arith.constant 3.200000e+01 : f32
    %318 = vector.broadcast %cst_128 : f32 to vector<16x1xf32>
    %319 = arith.divf %317, %318 : vector<16x1xf32>
    %cst_129 = arith.constant 9.99999996E-13 : f32
    %320 = vector.broadcast %cst_129 : f32 to vector<16x1xf32>
    %321 = arith.addf %319, %320 : vector<16x1xf32>
    %322 = math.rsqrt %321 : vector<16x1xf32>
    %323 = vector.broadcast %322 : vector<16x1xf32> to vector<16x32xf32>
    %324 = arith.mulf %314, %323 : vector<16x32xf32>
    %325 = vector.broadcast %306 : vector<1x32xf32> to vector<16x32xf32>
    %326 = arith.mulf %324, %325 : vector<16x32xf32>
    %327 = vector.broadcast %308 : vector<1x32xf32> to vector<16x32xf32>
    %328 = arith.addf %326, %327 : vector<16x32xf32>
    %329 = vector.extract_strided_slice %328 {offsets = [0, 0], sizes = [1, 32], strides = [1, 1]} : vector<16x32xf32> to vector<1x32xf32>
    %330 = vector.extract_strided_slice %328 {offsets = [8, 0], sizes = [1, 32], strides = [1, 1]} : vector<16x32xf32> to vector<1x32xf32>
    %331 = tpu.concatenate %329, %330 in 0 : vector<1x32xf32>, vector<1x32xf32> -> vector<2x32xf32>
    %332 = arith.truncf %331 : vector<2x32xf32> to vector<2x32xbf16>
    %c0_130 = arith.constant 0 : index
    %c0_131 = arith.constant 0 : index
    %333 = vector.load %arg18[%c0_130, %c0_131] : memref<32x32xbf16, #tpu.memory_space<vmem>>, vector<32x32xbf16>
    %cst_132 = arith.constant dense<0.000000e+00> : vector<2x32xf32>
    %334 = tpu.matmul %332, %333, %cst_132 {dimension_numbers = #tpu.dot_dimension_numbers<[1], [0], [0], [1], [0, 0, 1, 1], [], []>} : vector<2x32xbf16>, vector<32x32xbf16>, vector<2x32xf32> -> vector<2x32xf32>
    %c0_133 = arith.constant 0 : index
    %c0_134 = arith.constant 0 : index
    %335 = vector.load %arg19[%c0_133, %c0_134] : memref<1x32xf32, #tpu.memory_space<vmem>>, vector<1x32xf32>
    %336 = vector.broadcast %335 : vector<1x32xf32> to vector<2x32xf32>
    %337 = arith.addf %334, %336 : vector<2x32xf32>
    %338 = math.tanh %337 : vector<2x32xf32>
    %339 = arith.truncf %338 : vector<2x32xf32> to vector<2x32xbf16>
    %c0_135 = arith.constant 0 : index
    %c0_136 = arith.constant 0 : index
    %340 = vector.load %arg20[%c0_135, %c0_136] : memref<32x2xbf16, #tpu.memory_space<vmem>>, vector<32x2xbf16>
    %cst_137 = arith.constant dense<0.000000e+00> : vector<2x2xf32>
    %341 = tpu.matmul %339, %340, %cst_137 {dimension_numbers = #tpu.dot_dimension_numbers<[1], [0], [0], [1], [0, 0, 1, 1], [], []>} : vector<2x32xbf16>, vector<32x2xbf16>, vector<2x2xf32> -> vector<2x2xf32>
    %c0_138 = arith.constant 0 : index
    %c0_139 = arith.constant 0 : index
    %342 = vector.load %arg21[%c0_138, %c0_139] : memref<1x2xf32, #tpu.memory_space<vmem>>, vector<1x2xf32>
    %343 = vector.broadcast %342 : vector<1x2xf32> to vector<2x2xf32>
    %344 = arith.addf %341, %343 : vector<2x2xf32>
    %c0_140 = arith.constant 0 : index
    %c0_141 = arith.constant 0 : index
    %345 = vector.load %arg24[%c0_140, %c0_141] : memref<2x2xf32, #tpu.memory_space<vmem>>, vector<2x2xf32>
    tpu.vector_store %arg24[%c0_140, %c0_141], %344 {strides = array<i32>} : memref<2x2xf32, #tpu.memory_space<vmem>>, vector<2x2xf32>,
    %cst_142 = arith.constant dense<0xFF800000> : vector<2xf32>
    %346 = vector.multi_reduction <maximumf>, %344, %cst_142 [1] : vector<2x2xf32> to vector<2xf32>
    %347 = vector.shape_cast %346 : vector<2xf32> to vector<2x1xf32>
    %348 = vector.broadcast %347 : vector<2x1xf32> to vector<2x2xf32>
    %349 = arith.subf %344, %348 : vector<2x2xf32>
    %350 = math.exp %349 : vector<2x2xf32>
    %cst_143 = arith.constant dense<0.000000e+00> : vector<2xf32>
    %351 = vector.multi_reduction <add>, %350, %cst_143 [1] : vector<2x2xf32> to vector<2xf32>
    %352 = vector.shape_cast %351 : vector<2xf32> to vector<2x1xf32>
    %353 = math.log %352 : vector<2x1xf32>
    %354 = arith.addf %347, %353 : vector<2x1xf32>
    %c0_144 = arith.constant 0 : index
    %c0_145 = arith.constant 0 : index
    %355 = vector.load %arg22[%c0_144, %c0_145] : memref<2x2xf32, #tpu.memory_space<vmem>>, vector<2x2xf32>
    %356 = vector.broadcast %354 : vector<2x1xf32> to vector<2x2xf32>
    %357 = arith.subf %356, %344 : vector<2x2xf32>
    %358 = arith.mulf %355, %357 : vector<2x2xf32>
    %cst_146 = arith.constant dense<0.000000e+00> : vector<2xf32>
    %359 = vector.multi_reduction <add>, %358, %cst_146 [1] : vector<2x2xf32> to vector<2xf32>
    %360 = vector.shape_cast %359 : vector<2xf32> to vector<2x1xf32>
    %cst_147 = arith.constant dense<0.000000e+00> : vector<1xf32>
    %361 = vector.multi_reduction <add>, %360, %cst_147 [0] : vector<2x1xf32> to vector<1xf32>
    %362 = vector.shape_cast %361 : vector<1xf32> to vector<1x1xf32>
    %cst_148 = arith.constant 5.000000e-01 : f32
    %363 = vector.broadcast %cst_148 : f32 to vector<1x1xf32>
    %364 = arith.mulf %362, %363 : vector<1x1xf32>
    %c0_149 = arith.constant 0 : index
    %c0_150 = arith.constant 0 : index
    %365 = vector.load %arg25[%c0_149, %c0_150] : memref<1x1xf32, #tpu.memory_space<vmem>>, vector<1x1xf32>
    tpu.vector_store %arg25[%c0_149, %c0_150], %364 {strides = array<i32>} : memref<1x1xf32, #tpu.memory_space<vmem>>, vector<1x1xf32>,
    return
  }
  func.func @transform_0(%arg0: i32) -> (i32, i32) {
    %c0_i32 = arith.constant 0 : i32
    %c0_i32_0 = arith.constant 0 : i32
    %c0_i32_1 = arith.constant 0 : i32
    return %c0_i32, %c0_i32_0 : i32, i32
  }
  func.func @transform_1(%arg0: i32) -> (i32, i32) {
    %c0_i32 = arith.constant 0 : i32
    %c0_i32_0 = arith.constant 0 : i32
    %c0_i32_1 = arith.constant 0 : i32
    return %c0_i32, %c0_i32_0 : i32, i32
  }
  func.func @transform_2(%arg0: i32) -> (i32, i32) {
    %c0_i32 = arith.constant 0 : i32
    %c0_i32_0 = arith.constant 0 : i32
    %c0_i32_1 = arith.constant 0 : i32
    return %c0_i32, %c0_i32_0 : i32, i32
  }
  func.func @transform_3(%arg0: i32) -> (i32, i32) {
    %c0_i32 = arith.constant 0 : i32
    %c0_i32_0 = arith.constant 0 : i32
    %c0_i32_1 = arith.constant 0 : i32
    return %c0_i32, %c0_i32_0 : i32, i32
  }
  func.func @transform_4(%arg0: i32) -> (i32, i32) {
    %c0_i32 = arith.constant 0 : i32
    %c0_i32_0 = arith.constant 0 : i32
    %c0_i32_1 = arith.constant 0 : i32
    return %c0_i32, %c0_i32_0 : i32, i32
  }
  func.func @transform_5(%arg0: i32) -> (i32, i32, i32) {
    %c0_i32 = arith.constant 0 : i32
    %c0_i32_0 = arith.constant 0 : i32
    %c0_i32_1 = arith.constant 0 : i32
    %c0_i32_2 = arith.constant 0 : i32
    return %c0_i32, %c0_i32_0, %c0_i32_1 : i32, i32, i32
  }
  func.func @transform_6(%arg0: i32) -> (i32, i32, i32) {
    %c0_i32 = arith.constant 0 : i32
    %c0_i32_0 = arith.constant 0 : i32
    %c0_i32_1 = arith.constant 0 : i32
    %c0_i32_2 = arith.constant 0 : i32
    return %c0_i32, %c0_i32_0, %c0_i32_1 : i32, i32, i32
  }
  func.func @transform_7(%arg0: i32) -> (i32, i32, i32) {
    %c0_i32 = arith.constant 0 : i32
    %c0_i32_0 = arith.constant 0 : i32
    %c0_i32_1 = arith.constant 0 : i32
    %c0_i32_2 = arith.constant 0 : i32
    return %c0_i32, %c0_i32_0, %c0_i32_1 : i32, i32, i32
  }
  func.func @transform_8(%arg0: i32) -> (i32, i32, i32) {
    %c0_i32 = arith.constant 0 : i32
    %c0_i32_0 = arith.constant 0 : i32
    %c0_i32_1 = arith.constant 0 : i32
    %c0_i32_2 = arith.constant 0 : i32
    return %c0_i32, %c0_i32_0, %c0_i32_1 : i32, i32, i32
  }
  func.func @transform_9(%arg0: i32) -> (i32, i32, i32) {
    %c0_i32 = arith.constant 0 : i32
    %c0_i32_0 = arith.constant 0 : i32
    %c0_i32_1 = arith.constant 0 : i32
    %c0_i32_2 = arith.constant 0 : i32
    return %c0_i32, %c0_i32_0, %c0_i32_1 : i32, i32, i32
  }
  func.func @transform_10(%arg0: i32) -> (i32, i32, i32) {
    %c0_i32 = arith.constant 0 : i32
    %c0_i32_0 = arith.constant 0 : i32
    %c0_i32_1 = arith.constant 0 : i32
    %c0_i32_2 = arith.constant 0 : i32
    return %c0_i32, %c0_i32_0, %c0_i32_1 : i32, i32, i32
  }
  func.func @transform_11(%arg0: i32) -> (i32, i32, i32) {
    %c0_i32 = arith.constant 0 : i32
    %c0_i32_0 = arith.constant 0 : i32
    %c0_i32_1 = arith.constant 0 : i32
    %c0_i32_2 = arith.constant 0 : i32
    return %c0_i32, %c0_i32_0, %c0_i32_1 : i32, i32, i32
  }
  func.func @transform_12(%arg0: i32) -> (i32, i32, i32) {
    %c0_i32 = arith.constant 0 : i32
    %c0_i32_0 = arith.constant 0 : i32
    %c0_i32_1 = arith.constant 0 : i32
    %c0_i32_2 = arith.constant 0 : i32
    return %c0_i32, %c0_i32_0, %c0_i32_1 : i32, i32, i32
  }
  func.func @transform_13(%arg0: i32) -> (i32, i32, i32) {
    %c0_i32 = arith.constant 0 : i32
    %c0_i32_0 = arith.constant 0 : i32
    %c0_i32_1 = arith.constant 0 : i32
    %c0_i32_2 = arith.constant 0 : i32
    return %c0_i32, %c0_i32_0, %c0_i32_1 : i32, i32, i32
  }
  func.func @transform_14(%arg0: i32) -> (i32, i32, i32) {
    %c0_i32 = arith.constant 0 : i32
    %c0_i32_0 = arith.constant 0 : i32
    %c0_i32_1 = arith.constant 0 : i32
    %c0_i32_2 = arith.constant 0 : i32
    return %c0_i32, %c0_i32_0, %c0_i32_1 : i32, i32, i32
  }
  func.func @transform_15(%arg0: i32) -> (i32, i32, i32) {
    %c0_i32 = arith.constant 0 : i32
    %c0_i32_0 = arith.constant 0 : i32
    %c0_i32_1 = arith.constant 0 : i32
    %c0_i32_2 = arith.constant 0 : i32
    return %c0_i32, %c0_i32_0, %c0_i32_1 : i32, i32, i32
  }
  func.func @transform_16(%arg0: i32) -> (i32, i32, i32) {
    %c0_i32 = arith.constant 0 : i32
    %c0_i32_0 = arith.constant 0 : i32
    %c0_i32_1 = arith.constant 0 : i32
    %c0_i32_2 = arith.constant 0 : i32
    return %c0_i32, %c0_i32_0, %c0_i32_1 : i32, i32, i32
  }
  func.func @transform_17(%arg0: i32) -> (i32, i32) {
    %c0_i32 = arith.constant 0 : i32
    %c0_i32_0 = arith.constant 0 : i32
    %c0_i32_1 = arith.constant 0 : i32
    return %c0_i32, %c0_i32_0 : i32, i32
  }
  func.func @transform_18(%arg0: i32) -> (i32, i32) {
    %c0_i32 = arith.constant 0 : i32
    %c0_i32_0 = arith.constant 0 : i32
    %c0_i32_1 = arith.constant 0 : i32
    return %c0_i32, %c0_i32_0 : i32, i32
  }
  func.func @transform_19(%arg0: i32) -> (i32, i32) {
    %c0_i32 = arith.constant 0 : i32
    %c0_i32_0 = arith.constant 0 : i32
    %c0_i32_1 = arith.constant 0 : i32
    return %c0_i32, %c0_i32_0 : i32, i32
  }
  func.func @transform_20(%arg0: i32) -> (i32, i32) {
    %c0_i32 = arith.constant 0 : i32
    %c0_i32_0 = arith.constant 0 : i32
    %c0_i32_1 = arith.constant 0 : i32
    return %c0_i32, %c0_i32_0 : i32, i32
  }
  func.func @transform_21(%arg0: i32) -> (i32, i32) {
    %c0_i32 = arith.constant 0 : i32
    %c0_i32_0 = arith.constant 0 : i32
    %c0_i32_1 = arith.constant 0 : i32
    return %c0_i32, %c0_i32_0 : i32, i32
  }
  func.func @transform_22(%arg0: i32) -> (i32, i32) {
    %c0_i32 = arith.constant 0 : i32
    %c0_i32_0 = arith.constant 0 : i32
    %c0_i32_1 = arith.constant 0 : i32
    return %c0_i32, %c0_i32_0 : i32, i32
  }
  func.func @transform_23(%arg0: i32) -> (i32, i32) {
    %c0_i32 = arith.constant 0 : i32
    %c0_i32_0 = arith.constant 0 : i32
    %c0_i32_1 = arith.constant 0 : i32
    return %c0_i32, %c0_i32_0 : i32, i32
  }
  func.func @transform_24(%arg0: i32) -> (i32, i32) {
    %c0_i32 = arith.constant 0 : i32
    %c0_i32_0 = arith.constant 0 : i32
    %c0_i32_1 = arith.constant 0 : i32
    return %c0_i32, %c0_i32_0 : i32, i32
  }
}

</mosaic_0001>

<bundles_post_ra>
// kernel: bert_classifier_forward.1
= control target key start
LH: loop header
LB: loop body
LE: loop exit
PB: predicated region body
PF: predicated region fallthrough
CT: control target
= control target key end

     0   :  { %s3130_s0 = inlined_call_operand.vmem [shape: f32[16,32], index: 0, kind: input, shape index: {}]   ;;  %s3131_s1 = inlined_call_operand.vmem [shape: f32[16,32], index: 1, kind: input, shape index: {}]   ;;  %s3132_s2 = inlined_call_operand.vmem [shape: f32[16,32], index: 2, kind: input, shape index: {}]   ;;  %s3133_s3 = inlined_call_operand.vmem [shape: f32[1,32], index: 3, kind: input, shape index: {}]   ;;  %s3134_s4 = inlined_call_operand.vmem [shape: f32[1,32], index: 4, kind: input, shape index: {}]   ;;  %s3135_s5 = inlined_call_operand.vmem [shape: bf16[2,32,96], index: 5, kind: input, shape index: {}]   ;;  %s3136_s6 = inlined_call_operand.vmem [shape: f32[2,1,96], index: 6, kind: input, shape index: {}]   ;;  %s3137_s7 = inlined_call_operand.vmem [shape: bf16[2,32,32], index: 7, kind: input, shape index: {}]   ;;  %s3138_s8 = inlined_call_operand.vmem [shape: f32[2,1,32], index: 8, kind: input, shape index: {}]   ;;  %s3139_s9 = inlined_call_operand.vmem [shape: f32[2,1,32], index: 9, kind: input, shape index: {}]   ;;  %s3140_s10 = inlined_call_operand.vmem [shape: f32[2,1,32], index: 10, kind: input, shape index: {}]   ;;  %s3141_s11 = inlined_call_operand.vmem [shape: bf16[2,32,64], index: 11, kind: input, shape index: {}]   ;;  %s3142_s12 = inlined_call_operand.vmem [shape: f32[2,1,64], index: 12, kind: input, shape index: {}]   ;;  %s3143_s13 = inlined_call_operand.vmem [shape: bf16[2,64,32], index: 13, kind: input, shape index: {}]   ;;  %s3144_s14 = inlined_call_operand.vmem [shape: f32[2,1,32], index: 14, kind: input, shape index: {}]   ;;  %s3145_s15 = inlined_call_operand.vmem [shape: f32[2,1,32], index: 15, kind: input, shape index: {}]   ;;  %s3146_s16 = inlined_call_operand.vmem [shape: f32[2,1,32], index: 16, kind: input, shape index: {}]   ;;  %s3147_s17 = inlined_call_operand.vmem [shape: bf16[32,32], index: 17, kind: input, shape index: {}]   ;;  %s3148_s18 = inlined_call_operand.vmem [shape: f32[1,32], index: 18, kind: input, shape index: {}]   ;;  %s3149_s19 = inlined_call_operand.vmem [shape: bf16[32,2], index: 19, kind: input, shape index: {}]   ;;  %s3150_s20 = inlined_call_operand.vmem [shape: f32[1,2], index: 20, kind: input, shape index: {}]   ;;  %s3151_s21 = inlined_call_operand.vmem [shape: f32[2,2], index: 21, kind: input, shape index: {}]   ;;  %s3152_s22 = inlined_call_operand.vmem [shape: f32[16,32], index: 22, kind: input, shape index: {}]   ;;  %s3153_s23 = inlined_call_operand.hbm [shape: f32[2,2], index: 23, kind: output, shape index: {0}]   ;;  %s3154_s24 = inlined_call_operand.hbm [shape: f32[1,1], index: 24, kind: output, shape index: {1}]  }
   0x1   :  { %3162 = sst [smem:[#allocation8_spill]] %s3130_s0 }
   0x2   :  { %3163 = sst [smem:[#allocation9_spill]] %s3131_s1 }
   0x3   :  { %3164 = sst [smem:[#allocation10_spill]] %s3132_s2 }
   0x4   :  { %3165 = sst [smem:[#allocation11_spill]] %s3133_s3 }
   0x5   :  { %3166 = sst [smem:[#allocation12_spill]] %s3134_s4 }
   0x6   :  { %3167 = sst [smem:[#allocation13_spill]] %s3135_s5 }
   0x7   :  { %3168 = sst [smem:[#allocation14_spill]] %s3136_s6 }
   0x8   :  { %3169 = sst [smem:[#allocation15_spill]] %s3137_s7 }
   0x9   :  { %3170 = sst [smem:[#allocation16_spill]] %s3138_s8 }
   0xa   :  { %30 = vsyncpa [#allocation3], 0  ;;  %s3171_s27 = sld [smem:[#allocation8_spill]]  ;;  %s3172_s2 = sld [smem:[#allocation9_spill]]  ;;  %v89_v4 = vld [vmem:[%s3152_s22] sm:$0xff]  ;;  %vm95_vm0 = vcmask 261120  }
   0xb   :  { %s3173_s7 = sld [smem:[#allocation10_spill]]  ;;  %v90_v9 = vld [vmem:[%s3152_s22 + $0x8] sm:$0xff] }
  0x10   :  { %v79_v0 = vld [vmem:[%s3171_s27] sm:$0xff]  ;;  %v80_v5 = vld [vmem:[%s3171_s27 + $0x8] sm:$0xff] }
  0x11   :  { %v81_v1 = vld [vmem:[%s3172_s2] sm:$0xff]  ;;  %v82_v6 = vld [vmem:[%s3172_s2 + $0x8] sm:$0xff] }
  0x12   :  { %v85_v2 = vld [vmem:[%s3173_s7] sm:$0xff]  ;;  %v83_v3 = vadd.f32 %v81_v1, %v79_v0  ;;  %v84_v7 = vadd.f32 %v82_v6, %v80_v5  ;;  %v86_v8 = vld [vmem:[%s3173_s7 + $0x8] sm:$0xff] }
  0x14   :  { %v87_v10 = vadd.f32 %v85_v2, %v83_v3  ;;  %v88_v11 = vadd.f32 %v86_v8, %v84_v7 }
  0x16   :  { %v91_v12 = vadd.f32 %v89_v4, %v87_v10  ;;  %v92_v13 = vadd.f32 %v90_v9, %v88_v11 }
  0x18   :  { %v96_v14 = vsel %vm95_vm0, %v91_v12, 0.0  ;;  %v99_v15 = vsel %vm95_vm0, %v92_v13, 0.0 }
  0x19   :  { %97 = vadd.xlane.f32.xlu0 %v96_v14 }
  0x1d   :  { %100 = vadd.xlane.f32.xlu0 %v99_v15 }
  0x1e   :  { %31 = vsyncpa [#allocation5], 0  ;;  %s3174_s2 = sld [smem:[#allocation13_spill]]  ;;  %v2552_v27 = vmov 0.0   ;;  %vm2553_vm1 = vmmov 0   ;;  %s3175_s3 = sld [smem:[#allocation11_spill]] }
  0x1f   :  { %2212 = vmatprep.subr.bf16.mxu0 %v2552_v27  ;;  %2220 = vmatprep.subr.bf16.mxu1 %v2552_v27  ;;  %s3176_s4 = sld [smem:[#allocation12_spill]]  ;;  %s3177_s26 = sld [smem:[#allocation14_spill]]  ;;  %vm216_vm2 = vcmask 130048   ;;  %vm407_vm3 = vcmask 64512   ;;  %vm461_vm4 = vcmask 1043456   ;;  %vm899_vm5 = vcmask 523264  }
  0x20   :  { %2216 = vmatprep.mubr.msk.bf16.mxu0 %vm2553_vm1, %v2552_v27  ;;  %2222 = vmatprep.mubr.msk.bf16.mxu1 %vm2553_vm1, %v2552_v27  ;;  %s2554_s28 = smov 112   ;;  %s2555_s6 = smov 96   ;;  %vm1852_vm6 = vcmask 1040384   ;;  %vm1989_vm7 = vcmask 9216  }
  0x21   :  { %s2556_s22 = smov 64   ;;  %s3178_s0 = sld [smem:[#allocation15_spill]] }
  0x24   :  { %v2414_v26 = vld [vmem:[%s3174_s2] sm:$0xff]   ;;  %v2415_v28 = vld [vmem:[%s3174_s2 + $0x8] sm:$0xff]  }
  0x25   :  { %2213 = vmatpush3.bf16.msra.mxu0 %v2414_v26  ;;  %v2048_v37 = vld [vmem:[%s3175_s3] ss:$0 sm:$0xff]  ;;  %s2557_s3 = smov 16  }
  0x26   :  { %2214 = vmatprep.subr.bf16.mxu0 %v2552_v27  ;;  %v2049_v41 = vld [vmem:[%s3176_s4] ss:$0 sm:$0xff]  ;;  %s3179_s4 = sld [smem:[#allocation16_spill]] }
  0x27   :  { %v2050_v46 = vld [vmem:[%s3177_s26] ss:$0 sm:$0xff] }
  0x29   :  { %2215 = vmatpush3.bf16.msra.mxu0 %v2415_v28 }
  0x2a   :  { %2226 = vmatprep.subr.bf16.mxu0 %v2552_v27 }
  0xa6   :  { %v98_v16 = vpop.xlane.xlu0 %97 }
  0xa7   :  { %v103_v17 = vmul.f32 0.03125, %v98_v16 }
  0xa9   :  { %v105_v18 = vsub.f32 %v91_v12, %v103_v17 }
  0xaa   :  { %v101_v19 = vpop.xlane.xlu0 %100 }
  0xab   :  { %v104_v20 = vmul.f32 0.03125, %v101_v19  ;;  %v107_v21 = vmul.f32 %v105_v18, %v105_v18 }
  0xad   :  { %v106_v22 = vsub.f32 %v92_v13, %v104_v20  ;;  %v109_v23 = vsel %vm95_vm0, %v107_v21, 0.0 }
  0xae   :  { %110 = vadd.xlane.f32.xlu1 %v109_v23 }
  0xaf   :  { %v108_v24 = vmul.f32 %v106_v22, %v106_v22 }
  0xb1   :  { %v112_v25 = vsel %vm95_vm0, %v108_v24, 0.0 }
  0xb2   :  { %113 = vadd.xlane.f32.xlu1 %v112_v25 }
 0x13b   :  { %v111_v29 = vpop.xlane.xlu1 %110 }
 0x13c   :  { %v115_v30 = vmul.f32 0.03125, %v111_v29 }
 0x13e   :  { %v117_v31 = vadd.f32 1e-12, %v115_v30 }
 0x13f   :  { %v114_v32 = vpop.xlane.xlu1 %113 }
 0x140   :  { %2438 = vrsqrt.f32 %v117_v31  ;;  %v116_v33 = vmul.f32 0.03125, %v114_v32 }
 0x142   :  { %v118_v34 = vadd.f32 1e-12, %v116_v33 }
 0x144   :  { %2440 = vrsqrt.f32 %v118_v34 }
 0x14a   :  { %v2439_v35 = vpop.eup %2438 }
 0x14b   :  { %v121_v36 = vmul.f32 %v2439_v35, %v105_v18 }
 0x14d   :  { %v129_v40 = vmul.f32 %v2048_v37, %v121_v36 }
 0x14e   :  { %v2441_v38 = vpop.eup %2440 }
 0x14f   :  { %v122_v39 = vmul.f32 %v2441_v38, %v106_v22  ;;  %v2733_v43 = vadd.f32 %v2049_v41, %v129_v40 }
 0x151   :  { %v130_v42 = vmul.f32 %v2048_v37, %v122_v39 }
 0x153   :  { %v2735_v44 = vadd.f32 %v2049_v41, %v130_v42 }
 0x155   :  { %v139_v45 = vpack.c.bf16 %v2735_v44, %v2733_v43 }
 0x157   :  { %2217 = vmatmul.mubr.msk.bf16.vlgmr.msra.gmra.mrb[0].mxu0 %vm95_vm0, %v139_v45 }
 0x158   :  { %2228 = vmatprep.mubr.msk.bf16.mxu0 %vm2553_vm1, %v2552_v27 }
 0x22a   :  { %v200_v47 = vpop.f32.mrb[0].mxu0 }
 0x22b   :  { %v2218_v48 = vpop.f32.mrb[1].mxu0  ;;  %v201_v50 = vadd.f32 %v2050_v46, %v200_v47 }
 0x22c   :  { %v203_v49 = vpop.f32.mrb[2].mxu0 }
 0x22d   :  { %v204_v51 = vadd.f32 %v2050_v46, %v203_v49  ;;  %v2219_v52 = vpop.f32.mrb[3].mxu0 }
 0x22f   :  { %v2745_v53 = vpack.c.bf16 %v204_v51, %v201_v50 }
 0x231   :  { %209 = vrot.lane.b32.xlu0 %v2745_v53, %s2554_s28  ;;  %v2750_v54 = vrot.slane %v2745_v53, 4 }
 0x233   :  { %212 = vrot.lane.b32.xlu1 %v2750_v54, %s2554_s28 }
 0x235   :  { %214 = vrot.lane.b32.xlu0 %v2745_v53, %s2555_s6 }
 0x2a3   :  { %v2756_v55 = vpop.permute.xlu0 %209 }
 0x2a4   :  { %263 = vrot.lane.b32.xlu1 %v2756_v55, %s2555_s6 }
 0x2a5   :  { %v2760_v56 = vpop.permute.xlu1 %212 }
 0x2a7   :  { %v215_v57 = vpop.permute.xlu0 %214 }
 0x2a8   :  { %359 = vrot.lane.b32.xlu1 %v2760_v56, %s2555_s6  ;;  %v221_v58 = vsel %vm216_vm2, %v215_v57, 0 }
 0x2a9   :  { %2221 = vmatpush3.bf16.xpose.msra.mxu1 %v221_v58 }
 0x2aa   :  { %2232 = vmatprep.subr.bf16.mxu1 %v2552_v27 }
 0x2ac   :  { %311 = vrot.lane.b32.xlu1 %v2750_v54, %s2555_s6 }
 0x2b0   :  { %2223 = vmatmul.mubr.msk.bf16.vlgmr.msra.gmra.mrb[0].mxu1 %vm216_vm2, %v2745_v53 }
 0x2b1   :  { %2234 = vmatprep.mubr.msk.bf16.mxu1 %vm2553_vm1, %v2552_v27 }
 0x316   :  { %v264_v59 = vpop.permute.xlu1 %263 }
 0x317   :  { %v269_v60 = vsel %vm216_vm2, %v264_v59, 0 }
 0x318   :  { %2227 = vmatpush3.bf16.xpose.msra.mxu0 %v269_v60 }
 0x319   :  { %2238 = vmatprep.subr.bf16.mxu0 %v2552_v27 }
 0x31a   :  { %v360_v61 = vpop.permute.xlu1 %359 }
 0x31b   :  { %v365_v63 = vsel %vm216_vm2, %v360_v61, 0 }
 0x31e   :  { %v312_v62 = vpop.permute.xlu1 %311 }
 0x31f   :  { %v317_v0 = vsel %vm216_vm2, %v312_v62, 0  ;;  %2229 = vmatmul.mubr.msk.bf16.vlgmr.msra.gmra.mrb[4].mxu0 %vm216_vm2, %v2756_v55 }
 0x320   :  { %2233 = vmatpush3.bf16.xpose.msra.mxu1 %v317_v0  ;;  %2239 = vmatpush3.bf16.xpose.msra.mxu0 %v365_v63 }
 0x321   :  { %2240 = vmatprep.mubr.msk.bf16.mxu0 %vm2553_vm1, %v2552_v27  ;;  %2250 = vmatprep.subr.bf16.mxu0 %v2552_v27 }
 0x322   :  { %2244 = vmatprep.subr.bf16.mxu1 %v2552_v27 }
 0x327   :  { %2235 = vmatmul.mubr.msk.bf16.vlgmr.msra.gmra.mrb[4].mxu1 %vm216_vm2, %v2750_v54  ;;  %2241 = vmatmul.mubr.msk.bf16.vlgmr.msra.gmra.mrb[8].mxu0 %vm216_vm2, %v2760_v56 }
 0x328   :  { %2252 = vmatprep.mubr.msk.bf16.mxu0 %vm2553_vm1, %v2552_v27  ;;  %2246 = vmatprep.mubr.msk.bf16.mxu1 %vm2553_vm1, %v2552_v27 }
 0x383   :  { %v257_v1 = vpop.f32.mrb[0].mxu1 }
 0x384   :  { %v2224_v2 = vpop.f32.mrb[1].mxu1  ;;  %v408_v10 = vsel %vm407_vm3, %v257_v1, -inf }
 0x385   :  { %v260_v3 = vpop.f32.mrb[2].mxu1 }
 0x386   :  { %v2225_v4 = vpop.f32.mrb[3].mxu1 }
 0x387   :  { %v2416_v4 = vld [vmem:[%s3178_s0] sm:$0xff]  }
 0x3f2   :  { %v305_v5 = vpop.f32.mrb[4].mxu0 }
 0x3f3   :  { %v2230_v6 = vpop.f32.mrb[5].mxu0  ;;  %v411_v7 = vsel %vm407_vm3, %v305_v5, -inf }
 0x3f4   :  { %412 = vmax.xlane.f32.xlu0 %v411_v7  ;;  %v308_v8 = vpop.f32.mrb[6].mxu0  ;;  %v2417_v6 = vld [vmem:[%s3178_s0 + $0x8] sm:$0xff]  }
 0x3f5   :  { %v2231_v9 = vpop.f32.mrb[7].mxu0 }
 0x3f8   :  { %409 = vmax.xlane.f32.xlu0 %v408_v10 }
 0x3fa   :  { %v353_v11 = vpop.f32.mrb[4].mxu1  ;;  %v401_v12 = vpop.f32.mrb[8].mxu0 }
 0x3fb   :  { %v2236_v13 = vpop.f32.mrb[5].mxu1  ;;  %v2242_v14 = vpop.f32.mrb[9].mxu0  ;;  %v414_v15 = vsel %vm407_vm3, %v353_v11, -inf  ;;  %v417_v16 = vsel %vm407_vm3, %v401_v12, -inf }
 0x3fc   :  { %v356_v17 = vpop.f32.mrb[6].mxu1  ;;  %415 = vmax.xlane.f32.xlu0 %v414_v15  ;;  %418 = vmax.xlane.f32.xlu1 %v417_v16  ;;  %v404_v18 = vpop.f32.mrb[10].mxu0 }
 0x3fd   :  { %v2237_v19 = vpop.f32.mrb[7].mxu1  ;;  %v2243_v20 = vpop.f32.mrb[11].mxu0 }
 0x481   :  { %v413_v21 = vpop.xlane.xlu0 %412 }
 0x482   :  { %v421_v22 = vsub.f32 %v305_v5, %v413_v21 }
 0x484   :  { %v426_v23 = vmul.f32 1.442695, %v421_v22 }
 0x485   :  { %v410_v32 = vpop.xlane.xlu0 %409 }
 0x486   :  { %2442 = vpow2.f32 %v426_v23  ;;  %v420_v36 = vsub.f32 %v257_v1, %v410_v32 }
 0x488   :  { %v424_v37 = vmul.f32 1.442695, %v420_v36 }
 0x489   :  { %v419_v24 = vpop.xlane.xlu1 %418  ;;  %v416_v33 = vpop.xlane.xlu0 %415 }
 0x48a   :  { %v423_v25 = vsub.f32 %v401_v12, %v419_v24  ;;  %v422_v34 = vsub.f32 %v353_v11, %v416_v33 }
 0x48c   :  { %v430_v26 = vmul.f32 1.442695, %v423_v25  ;;  %v428_v35 = vmul.f32 1.442695, %v422_v34 }
 0x48e   :  { %2444 = vpow2.f32 %v430_v26 }
 0x48f   :  { %2446 = vpow2.f32 %v428_v35 }
 0x490   :  { %v2443_v28 = vpop.eup %2442  ;;  %2448 = vpow2.f32 %v424_v37 }
 0x491   :  { %v435_v29 = vsel %vm407_vm3, %v2443_v28, 0.0 }
 0x492   :  { %436 = vadd.xlane.f32.xlu0 %v435_v29 }
 0x498   :  { %v2445_v30 = vpop.eup %2444 }
 0x499   :  { %v441_v31 = vsel %vm407_vm3, %v2445_v30, 0.0  ;;  %v2447_v38 = vpop.eup %2446 }
 0x49a   :  { %442 = vadd.xlane.f32.xlu1 %v441_v31  ;;  %v438_v39 = vsel %vm407_vm3, %v2447_v38, 0.0  ;;  %v2449_v40 = vpop.eup %2448 }
 0x49b   :  { %v432_v41 = vsel %vm407_vm3, %v2449_v40, 0.0 }
 0x4a8   :  { %505 = vrot.lane.b32.xlu0 %v2756_v55, %s2556_s22 }
 0x4ab   :  { %601 = vrot.lane.b32.xlu1 %v2760_v56, %s2556_s22 }
 0x4c7   :  { %439 = vadd.xlane.f32.xlu0 %v438_v39 }
 0x4cf   :  { %433 = vadd.xlane.f32.xlu1 %v432_v41 }
 0x4dd   :  { %456 = vrot.lane.b32.xlu0 %v2745_v53, %s2556_s22 }
 0x4e0   :  { %553 = vrot.lane.b32.xlu1 %v2750_v54, %s2556_s22 }
 0x51f   :  { %v437_v42 = vpop.xlane.xlu0 %436 }
 0x520   :  { %2450 = vrcp.f32 %v437_v42 }
 0x523   :  { %v506_v45 = vpop.permute.xlu0 %505 }
 0x524   :  { %v511_v46 = vsel %vm461_vm4, %v506_v45, 0 }
 0x525   :  { %2251 = vmatpush3.bf16.msra.mxu0 %v511_v46 }
 0x526   :  { %2262 = vmatprep.subr.bf16.mxu0 %v2552_v27 }
 0x527   :  { %v443_v47 = vpop.xlane.xlu1 %442 }
 0x528   :  { %2452 = vrcp.f32 %v443_v47 }
 0x52a   :  { %v2451_v48 = vpop.eup %2450 }
 0x52b   :  { %v449_v49 = vmul.f32 %v2451_v48, %v2443_v28  ;;  %v602_v50 = vpop.permute.xlu1 %601 }
 0x52c   :  { %v607_v52 = vsel %vm461_vm4, %v602_v50, 0 }
 0x52d   :  { %v453_v51 = vpack.c.bf16 %v449_v49, %v449_v49 }
 0x52f   :  { %2253 = vmatmul.mubr.msk.bf16.vlgmr.msra.gmra.mrb[12].mxu0 %vm407_vm3, %v453_v51 }
 0x530   :  { %2263 = vmatpush3.bf16.msra.mxu0 %v607_v52  ;;  %2264 = vmatprep.mubr.msk.bf16.mxu0 %vm2553_vm1, %v2552_v27  ;;  %v2419_v52 = vld [vmem:[%s3141_s11 + $0x8] sm:$0xff]  }
 0x531   :  { %2276 = vmatprep.subr.bf16.mxu0 %v2552_v27 }
 0x532   :  { %v2453_v53 = vpop.eup %2452 }
 0x533   :  { %v451_v54 = vmul.f32 %v2453_v53, %v2445_v30  ;;  %v2062_v30 = vld [vmem:[%s3179_s4] ss:$0 sm:$0xff] }
 0x535   :  { %v455_v55 = vpack.c.bf16 %v451_v54, %v451_v54 }
 0x537   :  { %2265 = vmatmul.mubr.msk.bf16.vlgmr.msra.gmra.mrb[16].mxu0 %vm407_vm3, %v455_v55 }
 0x538   :  { %2280 = vmatprep.mubr.msk.bf16.mxu0 %vm2553_vm1, %v2552_v27 }
 0x554   :  { %v440_v56 = vpop.xlane.xlu0 %439 }
 0x558   :  { %v457_v57 = vpop.permute.xlu0 %456 }
 0x559   :  { %v463_v58 = vsel %vm461_vm4, %v457_v57, 0 }
 0x55a   :  { %2245 = vmatpush3.bf16.msra.mxu1 %v463_v58 }
 0x55b   :  { %2256 = vmatprep.subr.bf16.mxu1 %v2552_v27 }
 0x55c   :  { %v434_v59 = vpop.xlane.xlu1 %433 }
 0x55d   :  { %2454 = vrcp.f32 %v434_v59 }
 0x55e   :  { %2456 = vrcp.f32 %v440_v56 }
 0x560   :  { %v554_v62 = vpop.permute.xlu1 %553 }
 0x561   :  { %v559_v1 = vsel %vm461_vm4, %v554_v62, 0 }
 0x567   :  { %v2455_v60 = vpop.eup %2454 }
 0x568   :  { %v448_v61 = vmul.f32 %v2455_v60, %v2449_v40  ;;  %v2457_v0 = vpop.eup %2456 }
 0x569   :  { %v450_v2 = vmul.f32 %v2457_v0, %v2447_v38 }
 0x56a   :  { %v452_v63 = vpack.c.bf16 %v448_v61, %v448_v61  ;;  %v2066_v61 = vld [vmem:[%s3139_s9] ss:$0 sm:$0xff] }
 0x56b   :  { %v454_v3 = vpack.c.bf16 %v450_v2, %v450_v2 }
 0x56c   :  { %2247 = vmatmul.mubr.msk.bf16.vlgmr.msra.gmra.mrb[8].mxu1 %vm407_vm3, %v452_v63 }
 0x56d   :  { %2257 = vmatpush3.bf16.msra.mxu1 %v559_v1  ;;  %2258 = vmatprep.mubr.msk.bf16.mxu1 %vm2553_vm1, %v2552_v27  ;;  %v2067_v1 = vld [vmem:[%s3140_s10] ss:$0 sm:$0xff] }
 0x56e   :  { %2268 = vmatprep.subr.bf16.mxu1 %v2552_v27 }
 0x574   :  { %2259 = vmatmul.mubr.msk.bf16.vlgmr.msra.gmra.mrb[12].mxu1 %vm407_vm3, %v454_v3 }
 0x575   :  { %2272 = vmatprep.mubr.msk.bf16.mxu1 %vm2553_vm1, %v2552_v27  ;;  %2269 = vmatpush3.bf16.msra.mxu1 %v2416_v4 }
 0x576   :  { %2270 = vmatprep.subr.bf16.mxu1 %v2552_v27 }
 0x579   :  { %2271 = vmatpush3.bf16.msra.mxu1 %v2417_v6  ;;  %v2420_v6 = vld [vmem:[%s3143_s13] sm:$0xff]  }
 0x57a   :  { %2284 = vmatprep.subr.bf16.mxu1 %v2552_v27 }
 0x602   :  { %v547_v5 = vpop.f32.mrb[12].mxu0 }
 0x603   :  { %v2254_v7 = vpop.f32.mrb[13].mxu0 }
 0x604   :  { %v550_v8 = vpop.f32.mrb[14].mxu0  ;;  %v2421_v7 = vld [vmem:[%s3143_s13 + $0x8] sm:$0xff]  }
 0x605   :  { %v2255_v9 = vpop.f32.mrb[15].mxu0  ;;  %v2422_v8 = vld [vmem:[%s3143_s13 + $0x10] sm:$0xff]  }
 0x606   :  { %v2423_v9 = vld [vmem:[%s3143_s13 + $0x18] sm:$0xff]  }
 0x60a   :  { %v643_v10 = vpop.f32.mrb[16].mxu0 }
 0x60b   :  { %v2404_v11 = vpack.i.bf16 %v643_v10, %v547_v5  ;;  %v2266_v12 = vpop.f32.mrb[17].mxu0  ;;  %v2068_v10 = vld [vmem:[%s3142_s12] ss:$0 sm:$0xff] }
 0x60c   :  { %v646_v13 = vpop.f32.mrb[18].mxu0 }
 0x60d   :  { %2405 = vrot.lane.b32.xlu1 %v2404_v11, %s2557_s3  ;;  %v2267_v14 = vpop.f32.mrb[19].mxu0 }
 0x63f   :  { %v499_v15 = vpop.f32.mrb[8].mxu1 }
 0x640   :  { %v2248_v16 = vpop.f32.mrb[9].mxu1 }
 0x641   :  { %v502_v17 = vpop.f32.mrb[10].mxu1 }
 0x642   :  { %v2249_v18 = vpop.f32.mrb[11].mxu1 }
 0x647   :  { %v595_v19 = vpop.f32.mrb[12].mxu1 }
 0x648   :  { %v2260_v20 = vpop.f32.mrb[13].mxu1 }
 0x649   :  { %v598_v21 = vpop.f32.mrb[14].mxu1 }
 0x64a   :  { %v2261_v22 = vpop.f32.mrb[15].mxu1 }
 0x67f   :  { %v2406_v23 = vpop.permute.xlu1 %2405 }
 0x680   :  { %v2408_v24 = vunpack.i.h.bf16 %v2406_v23  ;;  %v2407_v25 = vunpack.i.l.bf16 %v2406_v23 }
 0x682   :  { %v658_v26 = vsel %vm216_vm2, %v595_v19, %v2408_v24  ;;  %v653_v28 = vsel %vm216_vm2, %v499_v15, %v2407_v25 }
 0x683   :  { %v659_v29 = vpack.c.bf16 %v658_v26, %v653_v28 }
 0x685   :  { %2273 = vmatmul.mubr.msk.bf16.vlgmr.msra.gmra.mrb[16].mxu1 %vm95_vm0, %v659_v29 }
 0x686   :  { %2292 = vmatprep.mubr.msk.bf16.mxu1 %vm2553_vm1, %v2552_v27  ;;  %2285 = vmatpush3.bf16.msra.mxu1 %v2420_v6 }
 0x687   :  { %2286 = vmatprep.subr.bf16.mxu1 %v2552_v27 }
 0x68a   :  { %2287 = vmatpush3.bf16.msra.mxu1 %v2421_v7 }
 0x68b   :  { %2288 = vmatprep.subr.bf16.mxu1 %v2552_v27 }
 0x68e   :  { %2289 = vmatpush3.bf16.msra.mxu1 %v2422_v8  ;;  %v2079_v8 = vld [vmem:[%s3146_s16] ss:$0 sm:$0xff] }
 0x68f   :  { %2290 = vmatprep.subr.bf16.mxu1 %v2552_v27 }
 0x692   :  { %2291 = vmatpush3.bf16.msra.mxu1 %v2423_v9 }
 0x693   :  { %2310 = vmatprep.subr.bf16.mxu1 %v2552_v27 }
 0x758   :  { %v720_v31 = vpop.f32.mrb[16].mxu1 }
 0x759   :  { %v721_v32 = vadd.f32 %v2062_v30, %v720_v31  ;;  %v2274_v33 = vpop.f32.mrb[17].mxu1 }
 0x75a   :  { %v723_v34 = vpop.f32.mrb[18].mxu1 }
 0x75b   :  { %v724_v35 = vadd.f32 %v2062_v30, %v723_v34  ;;  %v2275_v36 = vpop.f32.mrb[19].mxu1  ;;  %v727_v37 = vadd.f32 %v721_v32, %v2733_v43 }
 0x75d   :  { %v731_v38 = vsel %vm95_vm0, %v727_v37, 0.0  ;;  %v728_v39 = vadd.f32 %v724_v35, %v2735_v44  ;;  %v2418_v44 = vld [vmem:[%s3141_s11] sm:$0xff]  }
 0x75e   :  { %732 = vadd.xlane.f32.xlu1 %v731_v38  ;;  %2277 = vmatpush3.bf16.msra.mxu0 %v2418_v44 }
 0x75f   :  { %v734_v40 = vsel %vm95_vm0, %v728_v39, 0.0  ;;  %2278 = vmatprep.subr.bf16.mxu0 %v2552_v27 }
 0x760   :  { %735 = vadd.xlane.f32.xlu0 %v734_v40 }
 0x762   :  { %2279 = vmatpush3.bf16.msra.mxu0 %v2419_v52 }
 0x763   :  { %2296 = vmatprep.subr.bf16.mxu0 %v2552_v27 }
 0x7eb   :  { %v733_v41 = vpop.xlane.xlu1 %732 }
 0x7ec   :  { %v737_v42 = vmul.f32 0.03125, %v733_v41 }
 0x7ed   :  { %v736_v45 = vpop.xlane.xlu0 %735 }
 0x7ee   :  { %v739_v46 = vsub.f32 %v727_v37, %v737_v42  ;;  %v738_v47 = vmul.f32 0.03125, %v736_v45  ;;  %v2072_v37 = vld [vmem:[%s3144_s14] ss:$0 sm:$0xff] }
 0x7f0   :  { %v740_v48 = vsub.f32 %v728_v39, %v738_v47  ;;  %v741_v49 = vmul.f32 %v739_v46, %v739_v46 }
 0x7f2   :  { %v743_v50 = vsel %vm95_vm0, %v741_v49, 0.0  ;;  %v742_v51 = vmul.f32 %v740_v48, %v740_v48 }
 0x7f3   :  { %744 = vadd.xlane.f32.xlu0 %v743_v50 }
 0x7f4   :  { %v746_v43 = vsel %vm95_vm0, %v742_v51, 0.0 }
 0x7f7   :  { %747 = vadd.xlane.f32.xlu0 %v746_v43 }
 0x880   :  { %v745_v53 = vpop.xlane.xlu0 %744 }
 0x881   :  { %v749_v54 = vmul.f32 0.03125, %v745_v53 }
 0x883   :  { %v751_v55 = vadd.f32 1e-12, %v749_v54 }
 0x884   :  { %v748_v56 = vpop.xlane.xlu0 %747 }
 0x885   :  { %2458 = vrsqrt.f32 %v751_v55  ;;  %v750_v57 = vmul.f32 0.03125, %v748_v56 }
 0x887   :  { %v752_v58 = vadd.f32 1e-12, %v750_v57 }
 0x889   :  { %2460 = vrsqrt.f32 %v752_v58  ;;  %v2424_v58 = vld [vmem:[%s3174_s2 + $0x10] sm:$0xff]  }
 0x88f   :  { %v2459_v59 = vpop.eup %2458 }
 0x890   :  { %v755_v60 = vmul.f32 %v2459_v59, %v739_v46  ;;  %v2425_v59 = vld [vmem:[%s3174_s2 + $0x18] sm:$0xff]  }
 0x892   :  { %v763_v63 = vmul.f32 %v2066_v61, %v755_v60 }
 0x893   :  { %v2461_v62 = vpop.eup %2460 }
 0x894   :  { %v756_v0 = vmul.f32 %v2461_v62, %v740_v48  ;;  %v771_v3 = vadd.f32 %v2067_v1, %v763_v63 }
 0x896   :  { %v764_v2 = vmul.f32 %v2066_v61, %v756_v0 }
 0x898   :  { %v772_v4 = vadd.f32 %v2067_v1, %v764_v2 }
 0x89a   :  { %v773_v5 = vpack.c.bf16 %v772_v4, %v771_v3 }
 0x89c   :  { %2281 = vmatmul.mubr.msk.bf16.vlgmr.msra.gmra.mrb[20].mxu0 %vm95_vm0, %v773_v5 }
 0x89d   :  { %2300 = vmatprep.mubr.msk.bf16.mxu0 %vm2553_vm1, %v2552_v27  ;;  %2297 = vmatpush3.bf16.msra.mxu0 %v2424_v58 }
 0x89e   :  { %2298 = vmatprep.subr.bf16.mxu0 %v2552_v27 }
 0x8a1   :  { %2299 = vmatpush3.bf16.msra.mxu0 %v2425_v59 }
 0x8a2   :  { %2304 = vmatprep.subr.bf16.mxu0 %v2552_v27 }
 0x96f   :  { %v834_v11 = vpop.f32.mrb[20].mxu0 }
 0x970   :  { %v835_v12 = vadd.f32 %v2068_v10, %v834_v11  ;;  %v2282_v13 = vpop.f32.mrb[21].mxu0 }
 0x971   :  { %v837_v14 = vpop.f32.mrb[22].mxu0  ;;  %v2085_v13 = vld [vmem:[%s3177_s26 + $0x1] ss:$0 sm:$0xff] }
 0x972   :  { %v843_v15 = vmul.f32 0.044715, %v835_v12  ;;  %v838_v16 = vadd.f32 %v2068_v10, %v837_v14  ;;  %v2283_v17 = vpop.f32.mrb[23].mxu0  ;;  %v841_v31 = vmul.f32 0.5, %v835_v12 }
 0x974   :  { %v845_v18 = vmul.f32 %v843_v15, %v835_v12  ;;  %v844_v19 = vmul.f32 0.044715, %v838_v16  ;;  %v842_v32 = vmul.f32 0.5, %v838_v16 }
 0x976   :  { %v847_v20 = vmul.f32 %v845_v18, %v835_v12  ;;  %v846_v21 = vmul.f32 %v844_v19, %v838_v16 }
 0x978   :  { %v849_v22 = vadd.f32 %v847_v20, %v835_v12  ;;  %v848_v23 = vmul.f32 %v846_v21, %v838_v16 }
 0x97a   :  { %v851_v24 = vmul.f32 0.7978846, %v849_v22  ;;  %v850_v25 = vadd.f32 %v848_v23, %v838_v16 }
 0x97c   :  { %2462 = vtanh.f32 %v851_v24  ;;  %v852_v26 = vmul.f32 0.7978846, %v850_v25 }
 0x97e   :  { %2464 = vtanh.f32 %v852_v26 }
 0x986   :  { %v2463_v28 = vpop.eup %2462 }
 0x987   :  { %v855_v29 = vadd.f32 1.0, %v2463_v28 }
 0x988   :  { %v2465_v30 = vpop.eup %2464 }
 0x989   :  { %v856_v33 = vadd.f32 1.0, %v2465_v30  ;;  %v857_v34 = vmul.f32 %v855_v29, %v841_v31 }
 0x98b   :  { %v858_v35 = vmul.f32 %v856_v33, %v842_v32 }
 0x98d   :  { %v859_v36 = vpack.c.bf16 %v858_v35, %v857_v34 }
 0x98f   :  { %2293 = vmatmul.mubr.msk.bf16.vlgmr.msra.gmra.mrb[20].mxu1 %vm899_vm5, %v859_v36 }
 0x990   :  { %2312 = vmatprep.mubr.msk.bf16.mxu1 %vm2553_vm1, %v2552_v27 }
 0xa62   :  { %v937_v38 = vpop.f32.mrb[20].mxu1 }
 0xa63   :  { %v938_v39 = vadd.f32 %v2072_v37, %v937_v38  ;;  %v2294_v40 = vpop.f32.mrb[21].mxu1 }
 0xa64   :  { %v940_v41 = vpop.f32.mrb[22].mxu1 }
 0xa65   :  { %v941_v42 = vadd.f32 %v2072_v37, %v940_v41  ;;  %v2295_v45 = vpop.f32.mrb[23].mxu1  ;;  %v944_v46 = vadd.f32 %v938_v39, %v771_v3  ;;  %v2078_v3 = vld [vmem:[%s3145_s15] ss:$0 sm:$0xff] }
 0xa67   :  { %v948_v47 = vsel %vm95_vm0, %v944_v46, 0.0  ;;  %v945_v48 = vadd.f32 %v941_v42, %v772_v4 }
 0xa68   :  { %949 = vadd.xlane.f32.xlu1 %v948_v47 }
 0xa69   :  { %v951_v49 = vsel %vm95_vm0, %v945_v48, 0.0 }
 0xa6a   :  { %952 = vadd.xlane.f32.xlu0 %v951_v49 }
 0xaf5   :  { %v950_v50 = vpop.xlane.xlu1 %949 }
 0xaf6   :  { %v954_v51 = vmul.f32 0.03125, %v950_v50 }
 0xaf7   :  { %v953_v43 = vpop.xlane.xlu0 %952 }
 0xaf8   :  { %v956_v44 = vsub.f32 %v944_v46, %v954_v51  ;;  %v955_v52 = vmul.f32 0.03125, %v953_v43 }
 0xafa   :  { %v957_v53 = vsub.f32 %v945_v48, %v955_v52  ;;  %v958_v54 = vmul.f32 %v956_v44, %v956_v44 }
 0xafc   :  { %v960_v55 = vsel %vm95_vm0, %v958_v54, 0.0  ;;  %v959_v56 = vmul.f32 %v957_v53, %v957_v53 }
 0xafd   :  { %961 = vadd.xlane.f32.xlu1 %v960_v55 }
 0xafe   :  { %v963_v57 = vsel %vm95_vm0, %v959_v56, 0.0 }
 0xaff   :  { %964 = vadd.xlane.f32.xlu0 %v963_v57 }
 0xb8a   :  { %v962_v60 = vpop.xlane.xlu1 %961 }
 0xb8b   :  { %v966_v61 = vmul.f32 0.03125, %v962_v60 }
 0xb8c   :  { %v965_v62 = vpop.xlane.xlu0 %964 }
 0xb8d   :  { %v968_v63 = vadd.f32 1e-12, %v966_v61  ;;  %v967_v0 = vmul.f32 0.03125, %v965_v62 }
 0xb8f   :  { %2466 = vrsqrt.f32 %v968_v63  ;;  %v969_v1 = vadd.f32 1e-12, %v967_v0 }
 0xb91   :  { %2468 = vrsqrt.f32 %v969_v1 }
 0xb99   :  { %v2467_v2 = vpop.eup %2466 }
 0xb9a   :  { %v972_v4 = vmul.f32 %v2467_v2, %v956_v44 }
 0xb9b   :  { %v2469_v5 = vpop.eup %2468 }
 0xb9c   :  { %v980_v6 = vmul.f32 %v2078_v3, %v972_v4  ;;  %v973_v7 = vmul.f32 %v2469_v5, %v957_v53 }
 0xb9e   :  { %v981_v9 = vmul.f32 %v2078_v3, %v973_v7  ;;  %v2909_v10 = vadd.f32 %v2079_v8, %v980_v6 }
 0xba0   :  { %v2911_v11 = vadd.f32 %v2079_v8, %v981_v9 }
 0xba2   :  { %v990_v12 = vpack.c.bf16 %v2911_v11, %v2909_v10 }
 0xba4   :  { %2301 = vmatmul.mubr.msk.bf16.vlgmr.msra.gmra.mrb[24].mxu0 %vm95_vm0, %v990_v12 }
 0xba5   :  { %2306 = vmatprep.mubr.msk.bf16.mxu0 %vm2553_vm1, %v2552_v27 }
 0xc77   :  { %v1053_v14 = vpop.f32.mrb[24].mxu0 }
 0xc78   :  { %v2302_v15 = vpop.f32.mrb[25].mxu0  ;;  %v1054_v17 = vadd.f32 %v2085_v13, %v1053_v14 }
 0xc79   :  { %v1056_v16 = vpop.f32.mrb[26].mxu0 }
 0xc7a   :  { %v1057_v18 = vadd.f32 %v2085_v13, %v1056_v16  ;;  %v2303_v19 = vpop.f32.mrb[27].mxu0 }
 0xc7c   :  { %v2921_v20 = vpack.c.bf16 %v1057_v18, %v1054_v17 }
 0xc7e   :  { %1062 = vrot.lane.b32.xlu1 %v2921_v20, %s2554_s28  ;;  %v2926_v21 = vrot.slane %v2921_v20, 4 }
 0xc80   :  { %1065 = vrot.lane.b32.xlu0 %v2926_v21, %s2554_s28 }
 0xc84   :  { %1163 = vrot.lane.b32.xlu0 %v2926_v21, %s2555_s6 }
 0xcf0   :  { %v2932_v22 = vpop.permute.xlu1 %1062 }
 0xcf1   :  { %1115 = vrot.lane.b32.xlu1 %v2932_v22, %s2555_s6 }
 0xcf2   :  { %v2936_v23 = vpop.permute.xlu0 %1065 }
 0xcf5   :  { %1211 = vrot.lane.b32.xlu1 %v2936_v23, %s2555_s6 }
 0xcf6   :  { %v1164_v31 = vpop.permute.xlu0 %1163 }
 0xcf7   :  { %v1169_v32 = vsel %vm216_vm2, %v1164_v31, 0 }
 0xcf9   :  { %1067 = vrot.lane.b32.xlu1 %v2921_v20, %s2555_s6 }
 0xd63   :  { %v1116_v24 = vpop.permute.xlu1 %1115 }
 0xd64   :  { %v1121_v25 = vsel %vm216_vm2, %v1116_v24, 0 }
 0xd65   :  { %2311 = vmatpush3.bf16.xpose.msra.mxu1 %v1121_v25 }
 0xd66   :  { %2322 = vmatprep.subr.bf16.mxu1 %v2552_v27 }
 0xd67   :  { %v1212_v26 = vpop.permute.xlu1 %1211 }
 0xd68   :  { %v1217_v29 = vsel %vm216_vm2, %v1212_v26, 0 }
 0xd6b   :  { %v1068_v28 = vpop.permute.xlu1 %1067 }
 0xd6c   :  { %v1073_v30 = vsel %vm216_vm2, %v1068_v28, 0  ;;  %2313 = vmatmul.mubr.msk.bf16.vlgmr.msra.gmra.mrb[24].mxu1 %vm216_vm2, %v2932_v22 }
 0xd6d   :  { %2305 = vmatpush3.bf16.xpose.msra.mxu0 %v1073_v30  ;;  %2323 = vmatpush3.bf16.xpose.msra.mxu1 %v1217_v29 }
 0xd6e   :  { %2324 = vmatprep.mubr.msk.bf16.mxu1 %vm2553_vm1, %v2552_v27  ;;  %2316 = vmatprep.subr.bf16.mxu0 %v2552_v27 }
 0xd6f   :  { %2334 = vmatprep.subr.bf16.mxu1 %v2552_v27 }
 0xd74   :  { %2307 = vmatmul.mubr.msk.bf16.vlgmr.msra.gmra.mrb[28].mxu0 %vm216_vm2, %v2921_v20  ;;  %2325 = vmatmul.mubr.msk.bf16.vlgmr.msra.gmra.mrb[28].mxu1 %vm216_vm2, %v2936_v23 }
 0xd75   :  { %2317 = vmatpush3.bf16.xpose.msra.mxu0 %v1169_v32  ;;  %2318 = vmatprep.mubr.msk.bf16.mxu0 %vm2553_vm1, %v2552_v27 }
 0xd76   :  { %2336 = vmatprep.mubr.msk.bf16.mxu1 %vm2553_vm1, %v2552_v27  ;;  %2328 = vmatprep.subr.bf16.mxu0 %v2552_v27 }
 0xd7c   :  { %2319 = vmatmul.mubr.msk.bf16.vlgmr.msra.gmra.mrb[32].mxu0 %vm216_vm2, %v2926_v21 }
 0xd7d   :  { %2330 = vmatprep.mubr.msk.bf16.mxu0 %vm2553_vm1, %v2552_v27 }
 0xe3f   :  { %v1157_v33 = vpop.f32.mrb[24].mxu1 }
 0xe40   :  { %v2314_v34 = vpop.f32.mrb[25].mxu1  ;;  %v1262_v35 = vsel %vm407_vm3, %v1157_v33, -inf }
 0xe41   :  { %v1160_v36 = vpop.f32.mrb[26].mxu1  ;;  %1263 = vmax.xlane.f32.xlu1 %v1262_v35 }
 0xe42   :  { %v2315_v37 = vpop.f32.mrb[27].mxu1  ;;  %v2426_v36 = vld [vmem:[%s3178_s0 + $0x10] sm:$0xff]  }
 0xe43   :  { %v2427_v37 = vld [vmem:[%s3178_s0 + $0x18] sm:$0xff]  }
 0xe47   :  { %v1109_v38 = vpop.f32.mrb[28].mxu0  ;;  %v1253_v39 = vpop.f32.mrb[28].mxu1 }
 0xe48   :  { %v2308_v40 = vpop.f32.mrb[29].mxu0  ;;  %v2326_v41 = vpop.f32.mrb[29].mxu1  ;;  %v1268_v42 = vsel %vm407_vm3, %v1253_v39, -inf  ;;  %v1259_v49 = vsel %vm407_vm3, %v1109_v38, -inf }
 0xe49   :  { %1269 = vmax.xlane.f32.xlu0 %v1268_v42  ;;  %v1112_v45 = vpop.f32.mrb[30].mxu0  ;;  %v1256_v46 = vpop.f32.mrb[30].mxu1 }
 0xe4a   :  { %v2309_v47 = vpop.f32.mrb[31].mxu0  ;;  %v2327_v48 = vpop.f32.mrb[31].mxu1 }
 0xe4d   :  { %1260 = vmax.xlane.f32.xlu0 %v1259_v49 }
 0xe4f   :  { %v1205_v50 = vpop.f32.mrb[32].mxu0 }
 0xe50   :  { %v2320_v51 = vpop.f32.mrb[33].mxu0  ;;  %v1265_v43 = vsel %vm407_vm3, %v1205_v50, -inf }
 0xe51   :  { %1266 = vmax.xlane.f32.xlu0 %v1265_v43  ;;  %v1208_v44 = vpop.f32.mrb[34].mxu0 }
 0xe52   :  { %v2321_v52 = vpop.f32.mrb[35].mxu0 }
 0xece   :  { %v1264_v53 = vpop.xlane.xlu1 %1263 }
 0xecf   :  { %v1272_v54 = vsub.f32 %v1157_v33, %v1264_v53 }
 0xed1   :  { %v1277_v55 = vmul.f32 1.442695, %v1272_v54 }
 0xed3   :  { %2470 = vpow2.f32 %v1277_v55 }
 0xed6   :  { %v1270_v56 = vpop.xlane.xlu0 %1269 }
 0xed7   :  { %v1274_v57 = vsub.f32 %v1253_v39, %v1270_v56 }
 0xed9   :  { %v1281_v58 = vmul.f32 1.442695, %v1274_v57 }
 0xeda   :  { %v1261_v63 = vpop.xlane.xlu0 %1260 }
 0xedb   :  { %2472 = vpow2.f32 %v1281_v58  ;;  %v1271_v0 = vsub.f32 %v1109_v38, %v1261_v63 }
 0xedd   :  { %v2471_v59 = vpop.eup %2470  ;;  %v1275_v1 = vmul.f32 1.442695, %v1271_v0 }
 0xede   :  { %v1286_v60 = vsel %vm407_vm3, %v2471_v59, 0.0  ;;  %v1267_v2 = vpop.xlane.xlu0 %1266 }
 0xedf   :  { %1287 = vadd.xlane.f32.xlu1 %v1286_v60  ;;  %2474 = vpow2.f32 %v1275_v1  ;;  %v1273_v3 = vsub.f32 %v1205_v50, %v1267_v2 }
 0xee1   :  { %v1279_v4 = vmul.f32 1.442695, %v1273_v3 }
 0xee3   :  { %2476 = vpow2.f32 %v1279_v4 }
 0xee5   :  { %v2473_v61 = vpop.eup %2472 }
 0xee6   :  { %v1292_v62 = vsel %vm407_vm3, %v2473_v61, 0.0 }
 0xee7   :  { %1293 = vadd.xlane.f32.xlu0 %v1292_v62 }
 0xee9   :  { %v2475_v5 = vpop.eup %2474 }
 0xeea   :  { %v1283_v6 = vsel %vm407_vm3, %v2475_v5, 0.0 }
 0xeed   :  { %v2477_v7 = vpop.eup %2476 }
 0xeee   :  { %v1289_v8 = vsel %vm407_vm3, %v2477_v7, 0.0 }
 0xef0   :  { %1355 = vrot.lane.b32.xlu1 %v2932_v22, %s2556_s22 }
 0xefd   :  { %1451 = vrot.lane.b32.xlu0 %v2936_v23, %s2556_s22 }
 0xf14   :  { %1284 = vadd.xlane.f32.xlu1 %v1283_v6 }
 0xf1c   :  { %1290 = vadd.xlane.f32.xlu0 %v1289_v8 }
 0xf25   :  { %1307 = vrot.lane.b32.xlu1 %v2921_v20, %s2556_s22 }
 0xf32   :  { %1403 = vrot.lane.b32.xlu0 %v2926_v21, %s2556_s22 }
 0xf6c   :  { %v1288_v9 = vpop.xlane.xlu1 %1287 }
 0xf6d   :  { %2478 = vrcp.f32 %v1288_v9 }
 0xf70   :  { %v1356_v12 = vpop.permute.xlu1 %1355 }
 0xf71   :  { %v1361_v13 = vsel %vm461_vm4, %v1356_v12, 0 }
 0xf72   :  { %2335 = vmatpush3.bf16.msra.mxu1 %v1361_v13 }
 0xf73   :  { %2346 = vmatprep.subr.bf16.mxu1 %v2552_v27 }
 0xf74   :  { %v1294_v14 = vpop.xlane.xlu0 %1293 }
 0xf75   :  { %2480 = vrcp.f32 %v1294_v14 }
 0xf77   :  { %v2479_v15 = vpop.eup %2478 }
 0xf78   :  { %v1300_v16 = vmul.f32 %v2479_v15, %v2471_v59  ;;  %v1452_v17 = vpop.permute.xlu0 %1451 }
 0xf79   :  { %v1457_v19 = vsel %vm461_vm4, %v1452_v17, 0 }
 0xf7a   :  { %v1304_v18 = vpack.c.bf16 %v1300_v16, %v1300_v16 }
 0xf7c   :  { %2337 = vmatmul.mubr.msk.bf16.vlgmr.msra.gmra.mrb[32].mxu1 %vm407_vm3, %v1304_v18 }
 0xf7d   :  { %2347 = vmatpush3.bf16.msra.mxu1 %v1457_v19  ;;  %2348 = vmatprep.mubr.msk.bf16.mxu1 %vm2553_vm1, %v2552_v27  ;;  %v2429_v19 = vld [vmem:[%s3141_s11 + $0x18] sm:$0xff]  }
 0xf7e   :  { %2360 = vmatprep.subr.bf16.mxu1 %v2552_v27 }
 0xf7f   :  { %v2481_v20 = vpop.eup %2480 }
 0xf80   :  { %v1302_v21 = vmul.f32 %v2481_v20, %v2473_v61  ;;  %v2102_v61 = vld [vmem:[%s3179_s4 + $0x1] ss:$0 sm:$0xff] }
 0xf82   :  { %v1306_v22 = vpack.c.bf16 %v1302_v21, %v1302_v21 }
 0xf84   :  { %2349 = vmatmul.mubr.msk.bf16.vlgmr.msra.gmra.mrb[36].mxu1 %vm407_vm3, %v1306_v22 }
 0xf85   :  { %2364 = vmatprep.mubr.msk.bf16.mxu1 %vm2553_vm1, %v2552_v27 }
 0xfa1   :  { %v1285_v23 = vpop.xlane.xlu1 %1284 }
 0xfa2   :  { %2482 = vrcp.f32 %v1285_v23 }
 0xfa5   :  { %v1308_v24 = vpop.permute.xlu1 %1307 }
 0xfa6   :  { %v1313_v25 = vsel %vm461_vm4, %v1308_v24, 0 }
 0xfa7   :  { %2329 = vmatpush3.bf16.msra.mxu0 %v1313_v25 }
 0xfa8   :  { %2340 = vmatprep.subr.bf16.mxu0 %v2552_v27 }
 0xfa9   :  { %v1291_v26 = vpop.xlane.xlu0 %1290 }
 0xfaa   :  { %2484 = vrcp.f32 %v1291_v26 }
 0xfac   :  { %v2483_v28 = vpop.eup %2482 }
 0xfad   :  { %v1299_v29 = vmul.f32 %v2483_v28, %v2475_v5  ;;  %v1404_v30 = vpop.permute.xlu0 %1403  ;;  %v2108_v28 = vld [vmem:[%s3139_s9 + $0x1] ss:$0 sm:$0xff] }
 0xfae   :  { %v1409_v32 = vsel %vm461_vm4, %v1404_v30, 0 }
 0xfaf   :  { %v1303_v31 = vpack.c.bf16 %v1299_v29, %v1299_v29 }
 0xfb1   :  { %2331 = vmatmul.mubr.msk.bf16.vlgmr.msra.gmra.mrb[36].mxu0 %vm407_vm3, %v1303_v31 }
 0xfb2   :  { %2341 = vmatpush3.bf16.msra.mxu0 %v1409_v32  ;;  %2342 = vmatprep.mubr.msk.bf16.mxu0 %vm2553_vm1, %v2552_v27 }
 0xfb3   :  { %2352 = vmatprep.subr.bf16.mxu0 %v2552_v27 }
 0xfb4   :  { %v2485_v33 = vpop.eup %2484 }
 0xfb5   :  { %v1301_v34 = vmul.f32 %v2485_v33, %v2477_v7  ;;  %v2109_v33 = vld [vmem:[%s3140_s10 + $0x1] ss:$0 sm:$0xff] }
 0xfb7   :  { %v1305_v35 = vpack.c.bf16 %v1301_v34, %v1301_v34 }
 0xfb9   :  { %2343 = vmatmul.mubr.msk.bf16.vlgmr.msra.gmra.mrb[40].mxu0 %vm407_vm3, %v1305_v35 }
 0xfba   :  { %2356 = vmatprep.mubr.msk.bf16.mxu0 %vm2553_vm1, %v2552_v27  ;;  %2353 = vmatpush3.bf16.msra.mxu0 %v2426_v36 }
 0xfbb   :  { %2354 = vmatprep.subr.bf16.mxu0 %v2552_v27 }
 0xfbe   :  { %2355 = vmatpush3.bf16.msra.mxu0 %v2427_v37 }
 0xfbf   :  { %2368 = vmatprep.subr.bf16.mxu0 %v2552_v27 }
0x104f   :  { %v1397_v38 = vpop.f32.mrb[32].mxu1 }
0x1050   :  { %v2338_v39 = vpop.f32.mrb[33].mxu1 }
0x1051   :  { %v1400_v40 = vpop.f32.mrb[34].mxu1  ;;  %v2431_v39 = vld [vmem:[%s3143_s13 + $0x28] sm:$0xff]  }
0x1052   :  { %v2339_v41 = vpop.f32.mrb[35].mxu1  ;;  %v2432_v40 = vld [vmem:[%s3143_s13 + $0x30] sm:$0xff]  }
0x1053   :  { %v2433_v41 = vld [vmem:[%s3143_s13 + $0x38] sm:$0xff]  }
0x1057   :  { %v1493_v42 = vpop.f32.mrb[36].mxu1 }
0x1058   :  { %v2409_v45 = vpack.i.bf16 %v1493_v42, %v1397_v38  ;;  %v2350_v46 = vpop.f32.mrb[37].mxu1  ;;  %v2430_v38 = vld [vmem:[%s3143_s13 + $0x20] sm:$0xff]  }
0x1059   :  { %v1496_v47 = vpop.f32.mrb[38].mxu1  ;;  %v2115_v42 = vld [vmem:[%s3142_s12 + $0x1] ss:$0 sm:$0xff] }
0x105a   :  { %2410 = vrot.lane.b32.xlu1 %v2409_v45, %s2557_s3  ;;  %v2351_v48 = vpop.f32.mrb[39].mxu1 }
0x1084   :  { %v1349_v49 = vpop.f32.mrb[36].mxu0 }
0x1085   :  { %v2332_v50 = vpop.f32.mrb[37].mxu0 }
0x1086   :  { %v1352_v51 = vpop.f32.mrb[38].mxu0 }
0x1087   :  { %v2333_v43 = vpop.f32.mrb[39].mxu0 }
0x108c   :  { %v1445_v44 = vpop.f32.mrb[40].mxu0 }
0x108d   :  { %v2344_v52 = vpop.f32.mrb[41].mxu0 }
0x108e   :  { %v1448_v53 = vpop.f32.mrb[42].mxu0 }
0x108f   :  { %v2345_v54 = vpop.f32.mrb[43].mxu0 }
0x10cc   :  { %v2411_v55 = vpop.permute.xlu1 %2410 }
0x10cd   :  { %v2413_v56 = vunpack.i.h.bf16 %v2411_v55  ;;  %v2412_v57 = vunpack.i.l.bf16 %v2411_v55 }
0x10cf   :  { %v1503_v58 = vsel %vm216_vm2, %v1349_v49, %v2412_v57  ;;  %v1508_v59 = vsel %vm216_vm2, %v1445_v44, %v2413_v56 }
0x10d0   :  { %v1509_v60 = vpack.c.bf16 %v1508_v59, %v1503_v58 }
0x10d2   :  { %2357 = vmatmul.mubr.msk.bf16.vlgmr.msra.gmra.mrb[44].mxu0 %vm95_vm0, %v1509_v60 }
0x10d3   :  { %2376 = vmatprep.mubr.msk.bf16.mxu0 %vm2553_vm1, %v2552_v27  ;;  %2369 = vmatpush3.bf16.msra.mxu0 %v2430_v38 }
0x10d4   :  { %2370 = vmatprep.subr.bf16.mxu0 %v2552_v27 }
0x10d7   :  { %2371 = vmatpush3.bf16.msra.mxu0 %v2431_v39 }
0x10d8   :  { %2372 = vmatprep.subr.bf16.mxu0 %v2552_v27 }
0x10db   :  { %2373 = vmatpush3.bf16.msra.mxu0 %v2432_v40 }
0x10dc   :  { %2374 = vmatprep.subr.bf16.mxu0 %v2552_v27 }
0x10df   :  { %2375 = vmatpush3.bf16.msra.mxu0 %v2433_v41  ;;  %v2137_v41 = vld [vmem:[%s3146_s16 + $0x1] ss:$0 sm:$0xff] }
0x11a5   :  { %v1572_v62 = vpop.f32.mrb[44].mxu0 }
0x11a6   :  { %v1573_v63 = vadd.f32 %v2102_v61, %v1572_v62  ;;  %v2358_v0 = vpop.f32.mrb[45].mxu0 }
0x11a7   :  { %v1575_v1 = vpop.f32.mrb[46].mxu0 }
0x11a8   :  { %v1576_v2 = vadd.f32 %v2102_v61, %v1575_v1  ;;  %v2359_v3 = vpop.f32.mrb[47].mxu0  ;;  %v1579_v4 = vadd.f32 %v1573_v63, %v2909_v10 }
0x11aa   :  { %v1585_v5 = vsel %vm95_vm0, %v1579_v4, 0.0  ;;  %v1580_v6 = vadd.f32 %v1576_v2, %v2911_v11  ;;  %v2428_v11 = vld [vmem:[%s3141_s11 + $0x10] sm:$0xff]  }
0x11ab   :  { %1586 = vadd.xlane.f32.xlu1 %v1585_v5  ;;  %2361 = vmatpush3.bf16.msra.mxu1 %v2428_v11 }
0x11ac   :  { %v1588_v7 = vsel %vm95_vm0, %v1580_v6, 0.0  ;;  %2362 = vmatprep.subr.bf16.mxu1 %v2552_v27 }
0x11ad   :  { %1589 = vadd.xlane.f32.xlu0 %v1588_v7 }
0x11af   :  { %2363 = vmatpush3.bf16.msra.mxu1 %v2429_v19 }
0x11b0   :  { %2380 = vmatprep.subr.bf16.mxu1 %v2552_v27 }
0x1238   :  { %v1587_v8 = vpop.xlane.xlu1 %1586 }
0x1239   :  { %v1591_v9 = vmul.f32 0.03125, %v1587_v8 }
0x123a   :  { %v1590_v12 = vpop.xlane.xlu0 %1589 }
0x123b   :  { %v1593_v13 = vsub.f32 %v1579_v4, %v1591_v9  ;;  %v1592_v14 = vmul.f32 0.03125, %v1590_v12  ;;  %v2128_v4 = vld [vmem:[%s3144_s14 + $0x1] ss:$0 sm:$0xff] }
0x123d   :  { %v1594_v15 = vsub.f32 %v1580_v6, %v1592_v14  ;;  %v1595_v16 = vmul.f32 %v1593_v13, %v1593_v13 }
0x123f   :  { %v1597_v17 = vsel %vm95_vm0, %v1595_v16, 0.0  ;;  %v1596_v18 = vmul.f32 %v1594_v15, %v1594_v15 }
0x1240   :  { %1598 = vadd.xlane.f32.xlu0 %v1597_v17 }
0x1241   :  { %v1600_v10 = vsel %vm95_vm0, %v1596_v18, 0.0 }
0x1242   :  { %1601 = vadd.xlane.f32.xlu1 %v1600_v10 }
0x12cd   :  { %v1599_v20 = vpop.xlane.xlu0 %1598 }
0x12ce   :  { %v1603_v21 = vmul.f32 0.03125, %v1599_v20 }
0x12cf   :  { %v1602_v22 = vpop.xlane.xlu1 %1601 }
0x12d0   :  { %v1605_v23 = vadd.f32 1e-12, %v1603_v21  ;;  %v1604_v24 = vmul.f32 0.03125, %v1602_v22 }
0x12d2   :  { %2486 = vrsqrt.f32 %v1605_v23  ;;  %v1606_v25 = vadd.f32 1e-12, %v1604_v24 }
0x12d4   :  { %2488 = vrsqrt.f32 %v1606_v25  ;;  %v2434_v25 = vld [vmem:[%s3147_s17] sm:$0xff]  }
0x12dc   :  { %v2487_v26 = vpop.eup %2486 }
0x12dd   :  { %v1609_v29 = vmul.f32 %v2487_v26, %v1593_v13  ;;  %v2435_v26 = vld [vmem:[%s3147_s17 + $0x8] sm:$0xff]  }
0x12de   :  { %v2489_v30 = vpop.eup %2488 }
0x12df   :  { %v1617_v31 = vmul.f32 %v2108_v28, %v1609_v29  ;;  %v1610_v32 = vmul.f32 %v2489_v30, %v1594_v15 }
0x12e1   :  { %v1618_v34 = vmul.f32 %v2108_v28, %v1610_v32  ;;  %v1625_v35 = vadd.f32 %v2109_v33, %v1617_v31 }
0x12e3   :  { %v1626_v36 = vadd.f32 %v2109_v33, %v1618_v34 }
0x12e5   :  { %v1627_v37 = vpack.c.bf16 %v1626_v36, %v1625_v35 }
0x12e7   :  { %2365 = vmatmul.mubr.msk.bf16.vlgmr.msra.gmra.mrb[40].mxu1 %vm95_vm0, %v1627_v37  ;;  %v2136_v37 = vld [vmem:[%s3145_s15 + $0x1] ss:$0 sm:$0xff] }
0x12e8   :  { %2384 = vmatprep.mubr.msk.bf16.mxu1 %vm2553_vm1, %v2552_v27  ;;  %2381 = vmatpush3.bf16.msra.mxu1 %v2434_v25 }
0x12e9   :  { %2382 = vmatprep.subr.bf16.mxu1 %v2552_v27 }
0x12ec   :  { %2383 = vmatpush3.bf16.msra.mxu1 %v2435_v26 }
0x12ed   :  { %2388 = vmatprep.subr.bf16.mxu1 %v2552_v27 }
0x13ba   :  { %v1690_v45 = vpop.f32.mrb[40].mxu1 }
0x13bb   :  { %v1691_v46 = vadd.f32 %v2115_v42, %v1690_v45  ;;  %v2366_v47 = vpop.f32.mrb[41].mxu1 }
0x13bc   :  { %v1693_v48 = vpop.f32.mrb[42].mxu1 }
0x13bd   :  { %v1699_v49 = vmul.f32 0.044715, %v1691_v46  ;;  %v1694_v50 = vadd.f32 %v2115_v42, %v1693_v48  ;;  %v2367_v51 = vpop.f32.mrb[43].mxu1  ;;  %v1697_v62 = vmul.f32 0.5, %v1691_v46 }
0x13be   :  { %v2138_v51 = vld [vmem:[%s3148_s18] ss:$0 sm:$0xff] }
0x13bf   :  { %v1701_v43 = vmul.f32 %v1699_v49, %v1691_v46  ;;  %v1700_v44 = vmul.f32 0.044715, %v1694_v50  ;;  %v1698_v63 = vmul.f32 0.5, %v1694_v50  ;;  %v2436_v49 = vld [vmem:[%s3149_s19] sm:$0xff]  }
0x13c1   :  { %v1703_v52 = vmul.f32 %v1701_v43, %v1691_v46  ;;  %v1702_v53 = vmul.f32 %v1700_v44, %v1694_v50 }
0x13c3   :  { %v1705_v54 = vadd.f32 %v1703_v52, %v1691_v46  ;;  %v1704_v55 = vmul.f32 %v1702_v53, %v1694_v50 }
0x13c5   :  { %v1707_v56 = vmul.f32 0.7978846, %v1705_v54  ;;  %v1706_v57 = vadd.f32 %v1704_v55, %v1694_v50  ;;  %v2437_v50 = vld [vmem:[%s3149_s19 + $0x8] sm:$0xff]  }
0x13c7   :  { %2490 = vtanh.f32 %v1707_v56  ;;  %v1708_v58 = vmul.f32 0.7978846, %v1706_v57 }
0x13c9   :  { %2492 = vtanh.f32 %v1708_v58 }
0x13d1   :  { %v2491_v59 = vpop.eup %2490 }
0x13d2   :  { %v1711_v60 = vadd.f32 1.0, %v2491_v59 }
0x13d3   :  { %v2493_v61 = vpop.eup %2492 }
0x13d4   :  { %v1712_v0 = vadd.f32 1.0, %v2493_v61  ;;  %v1713_v1 = vmul.f32 %v1711_v60, %v1697_v62 }
0x13d6   :  { %v1714_v2 = vmul.f32 %v1712_v0, %v1698_v63 }
0x13d8   :  { %v1715_v3 = vpack.c.bf16 %v1714_v2, %v1713_v1 }
0x13da   :  { %2377 = vmatmul.mubr.msk.bf16.vlgmr.msra.gmra.mrb[48].mxu0 %vm899_vm5, %v1715_v3 }
0x14ad   :  { %v1794_v5 = vpop.f32.mrb[48].mxu0 }
0x14ae   :  { %v1795_v6 = vadd.f32 %v2128_v4, %v1794_v5  ;;  %v2378_v7 = vpop.f32.mrb[49].mxu0 }
0x14af   :  { %v1797_v8 = vpop.f32.mrb[50].mxu0 }
0x14b0   :  { %v1798_v9 = vadd.f32 %v2128_v4, %v1797_v8  ;;  %v2379_v12 = vpop.f32.mrb[51].mxu0  ;;  %v1801_v13 = vadd.f32 %v1795_v6, %v1625_v35  ;;  %v2003_v8 = vld [vmem:[%s3151_s21] sm:$0x3] }
0x14b2   :  { %v1807_v14 = vsel %vm95_vm0, %v1801_v13, 0.0  ;;  %v1802_v15 = vadd.f32 %v1798_v9, %v1626_v36 }
0x14b3   :  { %1808 = vadd.xlane.f32.xlu1 %v1807_v14 }
0x14b4   :  { %v1810_v16 = vsel %vm95_vm0, %v1802_v15, 0.0 }
0x14b5   :  { %1811 = vadd.xlane.f32.xlu0 %v1810_v16 }
0x1540   :  { %v1809_v17 = vpop.xlane.xlu1 %1808 }
0x1541   :  { %v1813_v18 = vmul.f32 0.03125, %v1809_v17 }
0x1542   :  { %v1812_v10 = vpop.xlane.xlu0 %1811 }
0x1543   :  { %v1815_v11 = vsub.f32 %v1801_v13, %v1813_v18  ;;  %v1814_v19 = vmul.f32 0.03125, %v1812_v10 }
0x1545   :  { %v1816_v20 = vsub.f32 %v1802_v15, %v1814_v19  ;;  %v1817_v21 = vmul.f32 %v1815_v11, %v1815_v11 }
0x1547   :  { %v1819_v22 = vsel %vm95_vm0, %v1817_v21, 0.0  ;;  %v1818_v23 = vmul.f32 %v1816_v20, %v1816_v20 }
0x1548   :  { %1820 = vadd.xlane.f32.xlu1 %v1819_v22 }
0x1549   :  { %v1822_v24 = vsel %vm95_vm0, %v1818_v23, 0.0 }
0x154a   :  { %1823 = vadd.xlane.f32.xlu0 %v1822_v24 }
0x15d5   :  { %v1821_v28 = vpop.xlane.xlu1 %1820 }
0x15d6   :  { %v1825_v29 = vmul.f32 0.03125, %v1821_v28 }
0x15d7   :  { %v1824_v30 = vpop.xlane.xlu0 %1823 }
0x15d8   :  { %v1827_v31 = vadd.f32 1e-12, %v1825_v29  ;;  %v1826_v32 = vmul.f32 0.03125, %v1824_v30 }
0x15da   :  { %2494 = vrsqrt.f32 %v1827_v31  ;;  %v1828_v33 = vadd.f32 1e-12, %v1826_v32 }
0x15dc   :  { %2496 = vrsqrt.f32 %v1828_v33 }
0x15e4   :  { %v2495_v34 = vpop.eup %2494 }
0x15e5   :  { %v1831_v35 = vmul.f32 %v2495_v34, %v1815_v11 }
0x15e6   :  { %v2497_v36 = vpop.eup %2496 }
0x15e7   :  { %v1832_v38 = vmul.f32 %v2497_v36, %v1816_v20  ;;  %v1839_v39 = vmul.f32 %v2136_v37, %v1831_v35 }
0x15e9   :  { %v1840_v40 = vmul.f32 %v2136_v37, %v1832_v38  ;;  %v1847_v45 = vadd.f32 %v2137_v41, %v1839_v39 }
0x15eb   :  { %v1848_v42 = vadd.f32 %v2137_v41, %v1840_v40 }
0x15ed   :  { %v1850_v46 = vrot.slane %v1848_v42, 7 }
0x15ef   :  { %v1853_v47 = vsel %vm1852_vm6, %v1847_v45, %v1850_v46 }
0x15f0   :  { %v1854_v48 = vpack.c.bf16 %v1853_v47, %v1853_v47 }
0x15f2   :  { %2385 = vmatmul.mubr.msk.bf16.vlgmr.msra.gmra.mrb[44].mxu1 %vm95_vm0, %v1854_v48 }
0x15f3   :  { %2392 = vmatprep.mubr.msk.bf16.mxu1 %vm2553_vm1, %v2552_v27  ;;  %2389 = vmatpush3.bf16.msra.mxu1 %v2436_v49 }
0x15f4   :  { %2390 = vmatprep.subr.bf16.mxu1 %v2552_v27  ;;  %v2142_v27 = vld [vmem:[%s3150_s20] ss:$0 sm:$0xff]  ;;  %s2558_s20 = smov [#allocation2]  }
0x15f5   :  { %s2026_s7 = sshll.u32 %s2558_s20, 4  ;;  %s2027_s7 = int_to_ptr.vmem [resolvable:$true] %s2026_s7 }
0x15f6   :  { %s2504_s10 = scalar_lea.vmem %s2027_s7, 32  ;;  %p2509_p1 = scmp.lt.s32.totalorder %s2027_s7, %s2027_s7 }
0x15f7   :  { %2391 = vmatpush3.bf16.msra.mxu1 %v2437_v50  ;;  %p2505_p0 = scmp.ne.s32.totalorder %s2027_s7, %s2504_s10  ;;  %p2510_p2 = scmp.lt.s32.totalorder %s2504_s10, %s2504_s10 }
0x15f9   :  { %p2511_p3 = por %p2510_p2, %p2509_p1 }
0x15fb   :  { %p2512_p4 = pnand %p2511_p3, %p2505_p0 }
0x16c5   :  { %v1915_v43 = vpop.f32.mrb[44].mxu1 }
0x16c6   :  { %v1916_v44 = vadd.f32 %v2138_v51, %v1915_v43  ;;  %v2386_v52 = vpop.f32.mrb[45].mxu1 }
0x16c7   :  { %v1918_v53 = vpop.f32.mrb[46].mxu1 }
0x16c8   :  { %2498 = vtanh.f32 %v1916_v44  ;;  %v2387_v54 = vpop.f32.mrb[47].mxu1 }
0x16d2   :  { %v2499_v55 = vpop.eup %2498 }
0x16d3   :  { %v1922_v56 = vpack.c.bf16 %v2499_v55, %v2499_v55 }
0x16d5   :  { %2393 = vmatmul.mubr.msk.bf16.vlgmr.msra.gmra.mrb[48].mxu1 %vm95_vm0, %v1922_v56 }
0x17a8   :  { %v1983_v57 = vpop.f32.mrb[48].mxu1 }
0x17a9   :  { %v1984_v58 = vadd.f32 %v2142_v27, %v1983_v57  ;;  %v2394_v59 = vpop.f32.mrb[49].mxu1 }
0x17aa   :  { %v1986_v60 = vpop.f32.mrb[50].mxu1 }
0x17ab   :  { %v2395_v61 = vpop.f32.mrb[51].mxu1  ;;  %v1991_v62 = vsel %vm1989_vm7, %v1984_v58, -inf  ;;  %1990 = vst.msk [vmem:[#allocation2] sm:$0x3] %vm1989_vm7, %v1984_v58 }
0x17ac   :  { %1992 = vmax.xlane.f32.xlu0 %v1991_v62 }
0x1839   :  { %v1993_v63 = vpop.xlane.xlu0 %1992 }
0x183a   :  { %v1994_v0 = vsub.f32 %v1984_v58, %v1993_v63 }
0x183c   :  { %v1995_v1 = vmul.f32 1.442695, %v1994_v0 }
0x183e   :  { %2500 = vpow2.f32 %v1995_v1 }
0x1848   :  { %v2501_v2 = vpop.eup %2500 }
0x1849   :  { %v1997_v3 = vsel %vm1989_vm7, %v2501_v2, 0.0 }
0x184a   :  { %1998 = vadd.xlane.f32.xlu1 %v1997_v3 }
0x18d7   :  { %v1999_v4 = vpop.xlane.xlu1 %1998 }
0x18d8   :  { %2502 = vlog2.f32 %v1999_v4 }
0x18e2   :  { %v2503_v5 = vpop.eup %2502 }
0x18e3   :  { %v2001_v6 = vmul.f32 0.6931472, %v2503_v5 }
0x18e5   :  { %v2002_v7 = vadd.f32 %v2001_v6, %v1993_v63 }
0x18e7   :  { %v2004_v9 = vsub.f32 %v2002_v7, %v1984_v58 }
0x18e9   :  { %v2005_v12 = vmul.f32 %v2004_v9, %v2003_v8 }
0x18eb   :  { %v2006_v13 = vsel %vm1989_vm7, %v2005_v12, 0.0 }
0x18ec   :  { %2007 = vadd.xlane.f32.xlu0 %v2006_v13 }
0x18ed   :  { %2515 = shalt.err (!%p2512_p4)
}
0x18ee   :  { %s2516_s6 = scalar_lea.hbm %s3153_s23, 32 }
0x18ef   :  { %p2517_p5 = scmp.ne.s32.totalorder %s3153_s23, %s2516_s6  ;;  %p2520_p6 = scmp.lt.u32.totalorder %s2516_s6, %s3153_s23 }
0x18f1   :  { %p2522_p7 = pnand %p2520_p6, %p2517_p5 }
0x18f3   :  { %2525 = shalt.err (!%p2522_p7)
}
0x18f4   :  { %2029 = dma.vmem_to_hbm [thread:$0]  %s2027_s7, 32, %s3153_s23, [#allocation3]   ;;  %vm2009_vm8 = vcmask 1041408   ;;  %vm2018_vm9 = vcmask 0  }
0x18f5   :  { %s2559_s3 = smov [#allocation4]  }
0x18f6   :  { %s2036_s4 = sshll.u32 %s2559_s3, 4  ;;  %s2037_s4 = int_to_ptr.vmem [resolvable:$true] %s2036_s4 }
0x18f7   :  { %s2526_s30 = scalar_lea.vmem %s2037_s4, 16  ;;  %s2530_s25 = scalar_lea.vmem %s2037_s4, 32 }
0x18f8   :  { %p2527_p8 = scmp.ne.s32.totalorder %s2037_s4, %s2526_s30  ;;  %p2531_p9 = scmp.lt.s32.totalorder %s2037_s4, %s2037_s4 }
0x18f9   :  { %p2532_p10 = scmp.lt.s32.totalorder %s2530_s25, %s2526_s30 }
0x18fb   :  { %p2533_p11 = por %p2532_p10, %p2531_p9 }
0x18fd   :  { %p2534_p12 = pnand %p2533_p11, %p2527_p8 }
0x1979   :  { %v2008_v14 = vpop.xlane.xlu0 %2007 }
0x197a   :  { %v2010_v15 = vsel %vm2009_vm8, %v2008_v14, 0.0 }
0x197b   :  { %v2011_v16 = vrot.slane %v2010_v15, 4 }
0x197d   :  { %v2012_v17 = vadd.f32 %v2011_v16, %v2010_v15 }
0x197f   :  { %v2013_v18 = vrot.slane %v2012_v17, 2 }
0x1981   :  { %v2014_v10 = vadd.f32 %v2013_v18, %v2012_v17 }
0x1983   :  { %v2015_v11 = vrot.slane %v2014_v10, 1 }
0x1985   :  { %v2016_v19 = vadd.f32 %v2015_v11, %v2014_v10 }
0x1987   :  { %v2017_v20 = vmul.f32 0.5, %v2016_v19 }
0x1989   :  { %2019 = vst.msk [vmem:[#allocation4] sm:$0x1] %vm2018_vm9, %v2017_v20 }
0x198a   :  { %2537 = shalt.err (!%p2534_p12)
}
0x198b   :  { %s2538_s17 = scalar_lea.hbm %s3154_s24, 16 }
0x198c   :  { %p2539_p13 = scmp.ne.s32.totalorder %s3154_s24, %s2538_s17  ;;  %p2542_p0 = scmp.lt.u32.totalorder %s2538_s17, %s3154_s24 }
0x198e   :  { %p2544_p1 = pnand %p2542_p0, %p2539_p13 }
0x1990   :  { %2547 = shalt.err (!%p2544_p1)
}
0x1991   :  { %2039 = dma.vmem_to_hbm [thread:$0]  %s2037_s4, 16, %s3154_s24, [#allocation5]  }
0x1992   :  { %2548 = dma.done.wait [#allocation3], 32  }
0x1993   :  { %2549 = vsyncadd [#allocation3], 4294967264 }
0x1994   :  { %2550 = dma.done.wait [#allocation5], 16  }
0x1995   :  { %2551 = vsyncadd [#allocation5], 4294967280 }
0x1996   :  { %2046 = vsyncpa [#allocation3], 1 }
0x1997   :  { %2047 = vsyncpa [#allocation5], 1 }

</bundles_post_ra>
